<compile_context>
chip_gen: v7x
topology: tpu7x:2x2x1
jax: 0.10.0
libtpu: 0.0.40
codegen_flags: <defaults>
</compile_context>

<pallas_src>
import math
from functools import partial  # noqa: F401  (kept for easy extension)

import jax
import jax.numpy as jnp
from jax.experimental import pallas as pl
from jax.experimental.pallas import tpu as pltpu

HID1, HID2, HID3 = 10, 10, 5
NUM_QUANTILES = 2          # len([alpha/2, 1 - alpha/2])
LANES = 128                # TPU lane width
TB_MAX = 512               # max batch rows per grid step (sublane-dense)


def _elu(h):
    # PyTorch nn.ELU with alpha=1:  x if x > 0 else exp(x) - 1
    return jnp.where(h > 0, h, jnp.exp(jnp.minimum(h, 0.0)) - 1.0)


def _mlp_kernel(x_ref, w1_ref, b1_ref, w2_ref, b2_ref, w3_ref, b3_ref,
                w4_ref, b4_ref, out_ref):
    # x block: (TB, 2) f32; weights are lane-padded to 128 columns.
    x = x_ref[...].astype(jnp.float32)
    x0 = x[:, 0:1]                                   # (TB, 1)
    x1 = x[:, 1:2]                                   # (TB, 1)

    # fc1 via two lane-broadcast multiply-adds (K == 2, VPU).
    h = x0 * w1_ref[0:1, :] + x1 * w1_ref[1:2, :] + b1_ref[...]   # (TB, 128)
    h = _elu(h)

    # fc2, fc3, fc4 as dense (TB,128)@(128,128) MXU matmuls on padded weights.
    h = jnp.dot(h, w2_ref[...], preferred_element_type=jnp.float32) + b2_ref[...]
    h = _elu(h)
    h = jnp.dot(h, w3_ref[...], preferred_element_type=jnp.float32) + b3_ref[...]
    h = _elu(h)
    h = jnp.dot(h, w4_ref[...], preferred_element_type=jnp.float32) + b4_ref[...]

    # Only the first NUM_QUANTILES lanes are real outputs (.view(-1, 2)).
    out_ref[...] = h[:, 0:NUM_QUANTILES]


def _pad2d(a, rows, cols):
    a = jnp.asarray(a, jnp.float32)
    return jnp.zeros((rows, cols), jnp.float32).at[:a.shape[0], :a.shape[1]].set(a)


def mlp_quantile_forward(x, params):
    """x: (N, 2) float32. params: (w1,b1,w2,b2,w3,b3,w4,b4) with PyTorch
    Linear semantics (w_i stored here as (in_features, out_features))."""
    w1, b1, w2, b2, w3, b3, w4, b4 = params
    n = x.shape[0]
    assert x.shape[1] == 2

    # Batch tile: big, sublane-dense; pad batch up to a multiple of the tile.
    tb = min(TB_MAX, ((n + 7) // 8) * 8)
    n_pad = ((n + tb - 1) // tb) * tb
    x_in = x.astype(jnp.float32)
    if n_pad != n:
        x_in = jnp.pad(x_in, ((0, n_pad - n), (0, 0)))

    # Zero-pad the tiny weights/biases to lane-dense tiles (done once, ~KiB).
    w1p = _pad2d(w1, 8, LANES)
    b1p = _pad2d(b1.reshape(1, -1), 1, LANES)
    w2p = _pad2d(w2, LANES, LANES)
    b2p = _pad2d(b2.reshape(1, -1), 1, LANES)
    w3p = _pad2d(w3, LANES, LANES)
    b3p = _pad2d(b3.reshape(1, -1), 1, LANES)
    w4p = _pad2d(w4, LANES, LANES)
    b4p = _pad2d(b4.reshape(1, -1), 1, LANES)

    const = lambda i: (0, 0)   # weights stay resident in VMEM across steps

    out = pl.pallas_call(
        _mlp_kernel,
        out_shape=jax.ShapeDtypeStruct((n_pad, NUM_QUANTILES), jnp.float32),
        grid_spec=pltpu.PrefetchScalarGridSpec(
            num_scalar_prefetch=0,
            grid=(n_pad // tb,),
            in_specs=[
                pl.BlockSpec((tb, 2), lambda i: (i, 0)),
                pl.BlockSpec((8, LANES), const),
                pl.BlockSpec((1, LANES), const),
                pl.BlockSpec((LANES, LANES), const),
                pl.BlockSpec((1, LANES), const),
                pl.BlockSpec((LANES, LANES), const),
                pl.BlockSpec((1, LANES), const),
                pl.BlockSpec((LANES, LANES), const),
                pl.BlockSpec((1, LANES), const),
            ],
            out_specs=pl.BlockSpec((tb, NUM_QUANTILES), lambda i: (i, 0)),
        ),
        compiler_params=pltpu.CompilerParams(
            dimension_semantics=("parallel",)),
    )(x_in, w1p, b1p, w2p, b2p, w3p, b3p, w4p, b4p)

    return out[:n]   # equivalent of x.view(-1, 2): already (N, 2)


def _reference(x, params):
    """Pure-JAX reference mirroring the PyTorch forward."""
    w1, b1, w2, b2, w3, b3, w4, b4 = params
    h = jax.nn.elu(x @ w1 + b1)
    h = jax.nn.elu(h @ w2 + b2)
    h = jax.nn.elu(h @ w3 + b3)
    h = h @ w4 + b4
    return h.reshape(-1, NUM_QUANTILES)


def _linear_init(key, fan_in, fan_out):
    # Matches torch.nn.Linear default init: U(-1/sqrt(fan_in), 1/sqrt(fan_in)).
    kw, kb = jax.random.split(key)
    bound = 1.0 / math.sqrt(fan_in)
    w = jax.random.uniform(kw, (fan_in, fan_out), jnp.float32, -bound, bound)
    b = jax.random.uniform(kb, (fan_out,), jnp.float32, -bound, bound)
    return w, b


if __name__ == "__main__":
    key = jax.random.PRNGKey(0)
    ks = jax.random.split(key, 5)

    N = 256                                   # small batch of (x, y) pairs
    x = jax.random.normal(ks[0], (N, 2), dtype=jnp.float32)

    w1, b1 = _linear_init(ks[1], 2, HID1)
    w2, b2 = _linear_init(ks[2], HID1, HID2)
    w3, b3 = _linear_init(ks[3], HID2, HID3)
    w4, b4 = _linear_init(ks[4], HID3, NUM_QUANTILES)
    params = (w1, b1, w2, b2, w3, b3, w4, b4)

    out = jax.block_until_ready(mlp_quantile_forward(x, params))

    ref = _reference(x, params)
    assert out.shape == (N, NUM_QUANTILES)
    assert jnp.allclose(out, ref, rtol=1e-3, atol=1e-3)

    print("KERNEL_OK")
</pallas_src>

<mosaic_0001>
module attributes {stable_mosaic.version = 11 : i64} {
  func.func @_mlp_kernel(%arg0: i32, %arg1: memref<256x2xf32, #tpu.memory_space<vmem>>, %arg2: memref<8x128xf32, #tpu.memory_space<vmem>>, %arg3: memref<1x128xf32, #tpu.memory_space<vmem>>, %arg4: memref<128x128xf32, #tpu.memory_space<vmem>>, %arg5: memref<1x128xf32, #tpu.memory_space<vmem>>, %arg6: memref<128x128xf32, #tpu.memory_space<vmem>>, %arg7: memref<1x128xf32, #tpu.memory_space<vmem>>, %arg8: memref<128x128xf32, #tpu.memory_space<vmem>>, %arg9: memref<1x128xf32, #tpu.memory_space<vmem>>, %arg10: memref<256x2xf32, #tpu.memory_space<vmem>>) attributes {dimension_semantics = [#tpu.dimension_semantics<parallel>], iteration_bounds = array<i64: 1>, scalar_prefetch = 0 : i64, scratch_operands = 0 : i64, tpu.core_type = #tpu.core_type<tc>, window_params = [{transform_indices = @transform_0, window_bounds = array<i64: 256, 2>}, {pipeline_mode = #tpu.pipeline_mode<synchronous>, transform_indices = @transform_1, window_bounds = array<i64: 8, 128>}, {pipeline_mode = #tpu.pipeline_mode<synchronous>, transform_indices = @transform_2, window_bounds = array<i64: 1, 128>}, {pipeline_mode = #tpu.pipeline_mode<synchronous>, transform_indices = @transform_3, window_bounds = array<i64: 128, 128>}, {pipeline_mode = #tpu.pipeline_mode<synchronous>, transform_indices = @transform_4, window_bounds = array<i64: 1, 128>}, {pipeline_mode = #tpu.pipeline_mode<synchronous>, transform_indices = @transform_5, window_bounds = array<i64: 128, 128>}, {pipeline_mode = #tpu.pipeline_mode<synchronous>, transform_indices = @transform_6, window_bounds = array<i64: 1, 128>}, {pipeline_mode = #tpu.pipeline_mode<synchronous>, transform_indices = @transform_7, window_bounds = array<i64: 128, 128>}, {pipeline_mode = #tpu.pipeline_mode<synchronous>, transform_indices = @transform_8, window_bounds = array<i64: 1, 128>}, {transform_indices = @transform_9, window_bounds = array<i64: 256, 2>}]} {
    %c0 = arith.constant 0 : index
    %c0_0 = arith.constant 0 : index
    %0 = vector.load %arg1[%c0, %c0_0] : memref<256x2xf32, #tpu.memory_space<vmem>>, vector<256x2xf32>
    %1 = vector.extract_strided_slice %0 {offsets = [0, 0], sizes = [256, 1], strides = [1, 1]} : vector<256x2xf32> to vector<256x1xf32>
    %2 = vector.extract_strided_slice %0 {offsets = [0, 1], sizes = [256, 1], strides = [1, 1]} : vector<256x2xf32> to vector<256x1xf32>
    %c0_1 = arith.constant 0 : index
    %c0_2 = arith.constant 0 : index
    %3 = vector.load %arg2[%c0_1, %c0_2] : memref<8x128xf32, #tpu.memory_space<vmem>>, vector<1x128xf32>
    %4 = vector.broadcast %1 : vector<256x1xf32> to vector<256x128xf32>
    %5 = vector.broadcast %3 : vector<1x128xf32> to vector<256x128xf32>
    %6 = arith.mulf %4, %5 : vector<256x128xf32>
    %c1 = arith.constant 1 : index
    %c0_3 = arith.constant 0 : index
    %7 = vector.load %arg2[%c1, %c0_3] : memref<8x128xf32, #tpu.memory_space<vmem>>, vector<1x128xf32>
    %8 = vector.broadcast %2 : vector<256x1xf32> to vector<256x128xf32>
    %9 = vector.broadcast %7 : vector<1x128xf32> to vector<256x128xf32>
    %10 = arith.mulf %8, %9 : vector<256x128xf32>
    %11 = arith.addf %6, %10 : vector<256x128xf32>
    %c0_4 = arith.constant 0 : index
    %c0_5 = arith.constant 0 : index
    %12 = vector.load %arg3[%c0_4, %c0_5] : memref<1x128xf32, #tpu.memory_space<vmem>>, vector<1x128xf32>
    %13 = vector.broadcast %12 : vector<1x128xf32> to vector<256x128xf32>
    %14 = arith.addf %11, %13 : vector<256x128xf32>
    %cst = arith.constant 0.000000e+00 : f32
    %15 = vector.broadcast %cst : f32 to vector<256x128xf32>
    %16 = arith.cmpf ogt, %14, %15 : vector<256x128xf32>
    %cst_6 = arith.constant 0.000000e+00 : f32
    %17 = vector.broadcast %cst_6 : f32 to vector<256x128xf32>
    %18 = arith.minimumf %14, %17 : vector<256x128xf32>
    %19 = math.exp %18 : vector<256x128xf32>
    %cst_7 = arith.constant 1.000000e+00 : f32
    %20 = vector.broadcast %cst_7 : f32 to vector<256x128xf32>
    %21 = arith.subf %19, %20 : vector<256x128xf32>
    %22 = arith.select %16, %14, %21 : vector<256x128xi1>, vector<256x128xf32>
    %c0_8 = arith.constant 0 : index
    %c0_9 = arith.constant 0 : index
    %23 = vector.load %arg4[%c0_8, %c0_9] : memref<128x128xf32, #tpu.memory_space<vmem>>, vector<128x128xf32>
    %cst_10 = arith.constant dense<0.000000e+00> : vector<256x128xf32>
    %24 = tpu.matmul %22, %23, %cst_10 {dimension_numbers = #tpu.dot_dimension_numbers<[1], [0], [0], [1], [0, 0, 1, 1], [], []>} : vector<256x128xf32>, vector<128x128xf32>, vector<256x128xf32> -> vector<256x128xf32>
    %c0_11 = arith.constant 0 : index
    %c0_12 = arith.constant 0 : index
    %25 = vector.load %arg5[%c0_11, %c0_12] : memref<1x128xf32, #tpu.memory_space<vmem>>, vector<1x128xf32>
    %26 = vector.broadcast %25 : vector<1x128xf32> to vector<256x128xf32>
    %27 = arith.addf %24, %26 : vector<256x128xf32>
    %cst_13 = arith.constant 0.000000e+00 : f32
    %28 = vector.broadcast %cst_13 : f32 to vector<256x128xf32>
    %29 = arith.cmpf ogt, %27, %28 : vector<256x128xf32>
    %cst_14 = arith.constant 0.000000e+00 : f32
    %30 = vector.broadcast %cst_14 : f32 to vector<256x128xf32>
    %31 = arith.minimumf %27, %30 : vector<256x128xf32>
    %32 = math.exp %31 : vector<256x128xf32>
    %cst_15 = arith.constant 1.000000e+00 : f32
    %33 = vector.broadcast %cst_15 : f32 to vector<256x128xf32>
    %34 = arith.subf %32, %33 : vector<256x128xf32>
    %35 = arith.select %29, %27, %34 : vector<256x128xi1>, vector<256x128xf32>
    %c0_16 = arith.constant 0 : index
    %c0_17 = arith.constant 0 : index
    %36 = vector.load %arg6[%c0_16, %c0_17] : memref<128x128xf32, #tpu.memory_space<vmem>>, vector<128x128xf32>
    %cst_18 = arith.constant dense<0.000000e+00> : vector<256x128xf32>
    %37 = tpu.matmul %35, %36, %cst_18 {dimension_numbers = #tpu.dot_dimension_numbers<[1], [0], [0], [1], [0, 0, 1, 1], [], []>} : vector<256x128xf32>, vector<128x128xf32>, vector<256x128xf32> -> vector<256x128xf32>
    %c0_19 = arith.constant 0 : index
    %c0_20 = arith.constant 0 : index
    %38 = vector.load %arg7[%c0_19, %c0_20] : memref<1x128xf32, #tpu.memory_space<vmem>>, vector<1x128xf32>
    %39 = vector.broadcast %38 : vector<1x128xf32> to vector<256x128xf32>
    %40 = arith.addf %37, %39 : vector<256x128xf32>
    %cst_21 = arith.constant 0.000000e+00 : f32
    %41 = vector.broadcast %cst_21 : f32 to vector<256x128xf32>
    %42 = arith.cmpf ogt, %40, %41 : vector<256x128xf32>
    %cst_22 = arith.constant 0.000000e+00 : f32
    %43 = vector.broadcast %cst_22 : f32 to vector<256x128xf32>
    %44 = arith.minimumf %40, %43 : vector<256x128xf32>
    %45 = math.exp %44 : vector<256x128xf32>
    %cst_23 = arith.constant 1.000000e+00 : f32
    %46 = vector.broadcast %cst_23 : f32 to vector<256x128xf32>
    %47 = arith.subf %45, %46 : vector<256x128xf32>
    %48 = arith.select %42, %40, %47 : vector<256x128xi1>, vector<256x128xf32>
    %c0_24 = arith.constant 0 : index
    %c0_25 = arith.constant 0 : index
    %49 = vector.load %arg8[%c0_24, %c0_25] : memref<128x128xf32, #tpu.memory_space<vmem>>, vector<128x128xf32>
    %cst_26 = arith.constant dense<0.000000e+00> : vector<256x128xf32>
    %50 = tpu.matmul %48, %49, %cst_26 {dimension_numbers = #tpu.dot_dimension_numbers<[1], [0], [0], [1], [0, 0, 1, 1], [], []>} : vector<256x128xf32>, vector<128x128xf32>, vector<256x128xf32> -> vector<256x128xf32>
    %c0_27 = arith.constant 0 : index
    %c0_28 = arith.constant 0 : index
    %51 = vector.load %arg9[%c0_27, %c0_28] : memref<1x128xf32, #tpu.memory_space<vmem>>, vector<1x128xf32>
    %52 = vector.broadcast %51 : vector<1x128xf32> to vector<256x128xf32>
    %53 = arith.addf %50, %52 : vector<256x128xf32>
    %54 = vector.extract_strided_slice %53 {offsets = [0, 0], sizes = [256, 2], strides = [1, 1]} : vector<256x128xf32> to vector<256x2xf32>
    %c0_29 = arith.constant 0 : index
    %c0_30 = arith.constant 0 : index
    %55 = vector.load %arg10[%c0_29, %c0_30] : memref<256x2xf32, #tpu.memory_space<vmem>>, vector<256x2xf32>
    tpu.vector_store %arg10[%c0_29, %c0_30], %54 {strides = array<i32>} : memref<256x2xf32, #tpu.memory_space<vmem>>, vector<256x2xf32>,
    return
  }
  func.func @transform_0(%arg0: i32) -> (i32, i32) {
    %c0_i32 = arith.constant 0 : i32
    %c0_i32_0 = arith.constant 0 : i32
    return %arg0, %c0_i32 : i32, i32
  }
  func.func @transform_1(%arg0: i32) -> (i32, i32) {
    %c0_i32 = arith.constant 0 : i32
    %c0_i32_0 = arith.constant 0 : i32
    %c0_i32_1 = arith.constant 0 : i32
    return %c0_i32, %c0_i32_0 : i32, i32
  }
  func.func @transform_2(%arg0: i32) -> (i32, i32) {
    %c0_i32 = arith.constant 0 : i32
    %c0_i32_0 = arith.constant 0 : i32
    %c0_i32_1 = arith.constant 0 : i32
    return %c0_i32, %c0_i32_0 : i32, i32
  }
  func.func @transform_3(%arg0: i32) -> (i32, i32) {
    %c0_i32 = arith.constant 0 : i32
    %c0_i32_0 = arith.constant 0 : i32
    %c0_i32_1 = arith.constant 0 : i32
    return %c0_i32, %c0_i32_0 : i32, i32
  }
  func.func @transform_4(%arg0: i32) -> (i32, i32) {
    %c0_i32 = arith.constant 0 : i32
    %c0_i32_0 = arith.constant 0 : i32
    %c0_i32_1 = arith.constant 0 : i32
    return %c0_i32, %c0_i32_0 : i32, i32
  }
  func.func @transform_5(%arg0: i32) -> (i32, i32) {
    %c0_i32 = arith.constant 0 : i32
    %c0_i32_0 = arith.constant 0 : i32
    %c0_i32_1 = arith.constant 0 : i32
    return %c0_i32, %c0_i32_0 : i32, i32
  }
  func.func @transform_6(%arg0: i32) -> (i32, i32) {
    %c0_i32 = arith.constant 0 : i32
    %c0_i32_0 = arith.constant 0 : i32
    %c0_i32_1 = arith.constant 0 : i32
    return %c0_i32, %c0_i32_0 : i32, i32
  }
  func.func @transform_7(%arg0: i32) -> (i32, i32) {
    %c0_i32 = arith.constant 0 : i32
    %c0_i32_0 = arith.constant 0 : i32
    %c0_i32_1 = arith.constant 0 : i32
    return %c0_i32, %c0_i32_0 : i32, i32
  }
  func.func @transform_8(%arg0: i32) -> (i32, i32) {
    %c0_i32 = arith.constant 0 : i32
    %c0_i32_0 = arith.constant 0 : i32
    %c0_i32_1 = arith.constant 0 : i32
    return %c0_i32, %c0_i32_0 : i32, i32
  }
  func.func @transform_9(%arg0: i32) -> (i32, i32) {
    %c0_i32 = arith.constant 0 : i32
    %c0_i32_0 = arith.constant 0 : i32
    return %arg0, %c0_i32 : i32, i32
  }
}

</mosaic_0001>

<bundles_post_ra>
// kernel: tpu_custom_call.1
= control target key start
LH: loop header
LB: loop body
LE: loop exit
PB: predicated region body
PF: predicated region fallthrough
CT: control target
= control target key end

     0   :  { %14 = vsyncpa [#allocation3], 0  ;;  %s3518_s0 = inlined_call_operand.vmem [shape: f32[256,2], index: 0, kind: input, shape index: {}]   ;;  %s3519_s1 = inlined_call_operand.hbm [shape: f32[8,128], index: 1, kind: input, shape index: {}]   ;;  %s3520_s2 = inlined_call_operand.vmem [shape: f32[1,128], index: 2, kind: input, shape index: {}]   ;;  %s3521_s3 = inlined_call_operand.vmem [shape: f32[128,128], index: 3, kind: input, shape index: {}]   ;;  %s3522_s4 = inlined_call_operand.vmem [shape: f32[1,128], index: 4, kind: input, shape index: {}]   ;;  %s3523_s5 = inlined_call_operand.vmem [shape: f32[128,128], index: 5, kind: input, shape index: {}]   ;;  %s3524_s6 = inlined_call_operand.vmem [shape: f32[1,128], index: 6, kind: input, shape index: {}]   ;;  %s3525_s7 = inlined_call_operand.hbm [shape: f32[128,128], index: 7, kind: input, shape index: {}]   ;;  %s3526_s8 = inlined_call_operand.vmem [shape: f32[1,128], index: 8, kind: input, shape index: {}]   ;;  %s3527_s9 = inlined_call_operand.vmem [shape: f32[256,2], index: 9, kind: output, shape index: {}]  }
   0x1   :  { %15 = vsyncpa [#allocation5], 0  ;;  %s2731_s30 = smov [#allocation2]   ;;  %s2732_s11 = smov [#allocation4]  }
   0x2   :  { %s24_s10 = sshll.u32 %s2731_s30, 4  ;;  %s43_s12 = sshll.u32 %s2732_s11, 4  ;;  %s25_s10 = int_to_ptr.vmem [resolvable:$true] %s24_s10  ;;  %s2787_s12 = int_to_ptr.vmem [resolvable:$true] %s43_s12 }
   0x3   :  { %s2683_s15 = scalar_lea.hbm %s3519_s1, 128 }
   0x4   :  { %p2684_p0 = scmp.ne.s32.totalorder %s3519_s1, %s2683_s15  ;;  %p2687_p1 = scmp.lt.u32.totalorder %s2683_s15, %s3519_s1 }
   0x6   :  { %p2689_p2 = pnand %p2687_p1, %p2684_p0 }
   0x8   :  { %2692 = shalt.err (!%p2689_p2)
}
   0x9   :  { %s2693_s20 = scalar_lea.vmem %s25_s10, 128  ;;  %p2698_p4 = scmp.lt.s32.totalorder %s25_s10, %s25_s10 }
   0xa   :  { %p2694_p3 = scmp.ne.s32.totalorder %s25_s10, %s2693_s20  ;;  %p2699_p5 = scmp.lt.s32.totalorder %s2693_s20, %s2693_s20 }
   0xc   :  { %p2700_p6 = por %p2699_p5, %p2698_p4 }
   0xe   :  { %p2701_p7 = pnand %p2700_p6, %p2694_p3 }
  0x10   :  { %2704 = shalt.err (!%p2701_p7)
}
  0x11   :  { %27 = dma.hbm_to_vmem [thread:$0]  %s3519_s1, 128, %s25_s10, [#allocation3]  }
  0x12   :  { %s2705_s25 = scalar_lea.hbm %s3525_s7, 2048 }
  0x13   :  { %p2706_p8 = scmp.ne.s32.totalorder %s3525_s7, %s2705_s25  ;;  %p2709_p9 = scmp.lt.u32.totalorder %s2705_s25, %s3525_s7 }
  0x15   :  { %p2711_p10 = pnand %p2709_p9, %p2706_p8 }
  0x17   :  { %2714 = shalt.err (!%p2711_p10)
}
  0x18   :  { %s2715_s30 = scalar_lea.vmem %s2787_s12, 2048  ;;  %p2720_p12 = scmp.lt.s32.totalorder %s2787_s12, %s2787_s12 }
  0x19   :  { %p2716_p11 = scmp.ne.s32.totalorder %s2787_s12, %s2715_s30  ;;  %p2721_p13 = scmp.lt.s32.totalorder %s2715_s30, %s2715_s30 }
  0x1b   :  { %p2722_p0 = por %p2721_p13, %p2720_p12 }
  0x1d   :  { %p2723_p1 = pnand %p2722_p0, %p2716_p11 }
  0x1f   :  { %2726 = shalt.err (!%p2723_p1)
}
  0x20   :  { %s2733_s1 = smov 128   ;;  %s2734_s10 = smov 8  }
  0x21   :  { %49 = dma.hbm_to_vmem [thread:$0]  %s3525_s7, 2048, %s2787_s12, [#allocation5], %s2733_s1, %s2733_s1, %s2734_s10  }
  0x22   :  { %2727 = dma.done.wait [#allocation3], 128  }
  0x23   :  { %2728 = vsyncadd [#allocation3], 4294967168 }
  0x24   :  { %2729 = dma.done.wait [#allocation5], 2048  }
  0x25   :  { %2730 = vsyncadd [#allocation5], 4294965248  ;;  %v2735_v0 = vmov 0   ;;  %v59_v1 = vld [vmem:[%s3518_s0 + $0x8] sm:$0xff]  ;;  %v58_v2 = vld [vmem:[%s3518_s0] sm:$0xff]  ;;  %v2736_v3 = vmov 1  }
  0x26   :  { %2488 = vset.pattern.permute.xlu1 %v2735_v0  ;;  %2486 = vset.pattern.permute.xlu0 %v2735_v0  ;;  %v60_v4 = vld [vmem:[%s3518_s0 + $0x10] sm:$0xff]  ;;  %v715_v5 = vld [vmem:[%s3521_s3] sm:$0xff]  ;;  %v61_v6 = vld [vmem:[%s3518_s0 + $0x18] sm:$0xff] }
  0x27   :  { %98 = vperm.xlu1 %2488, %v59_v1   ;;  %93 = vperm.xlu0 %2486, %v58_v2   ;;  %v716_v7 = vld [vmem:[%s3521_s3 + $0x8] sm:$0xff]  ;;  %v717_v8 = vld [vmem:[%s3521_s3 + $0x10] sm:$0xff]  ;;  %v718_v10 = vld [vmem:[%s3521_s3 + $0x18] sm:$0xff] }
  0x28   :  { %v2368_v9 = vpack.c.bf16 %v716_v7, %v715_v5  ;;  %v2372_v11 = vpack.c.bf16 %v718_v10, %v717_v8  ;;  %v719_v12 = vld [vmem:[%s3521_s3 + $0x20] sm:$0xff]  ;;  %v720_v13 = vld [vmem:[%s3521_s3 + $0x28] sm:$0xff]  ;;  %v721_v16 = vld [vmem:[%s3521_s3 + $0x30] sm:$0xff] }
  0x29   :  { %v62_v14 = vld [vmem:[%s3518_s0 + $0x20] sm:$0xff]  ;;  %v2376_v15 = vpack.c.bf16 %v720_v13, %v719_v12  ;;  %v722_v17 = vld [vmem:[%s3521_s3 + $0x38] sm:$0xff]  ;;  %v63_v18 = vld [vmem:[%s3518_s0 + $0x28] sm:$0xff] }
  0x2a   :  { %2369 = vmatprep.subr.bf16.mxu0 %v2368_v9  ;;  %2464 = vmatprep.subr.bf16.mxu1 %v2368_v9  ;;  %v2380_v19 = vpack.c.bf16 %v722_v17, %v721_v16  ;;  %v723_v20 = vld [vmem:[%s3521_s3 + $0x40] sm:$0xff]  ;;  %v724_v21 = vld [vmem:[%s3521_s3 + $0x48] sm:$0xff]  ;;  %v64_v22 = vld [vmem:[%s3518_s0 + $0x30] sm:$0xff] }
  0x2b   :  { %2489 = vset.pattern.permute.xlu1 %v2736_v3  ;;  %2487 = vset.pattern.permute.xlu0 %v2736_v3  ;;  %v2384_v23 = vpack.c.bf16 %v724_v21, %v723_v20  ;;  %v725_v24 = vld [vmem:[%s3521_s3 + $0x50] sm:$0xff]  ;;  %v726_v25 = vld [vmem:[%s3521_s3 + $0x58] sm:$0xff]  ;;  %v727_v28 = vld [vmem:[%s3521_s3 + $0x60] sm:$0xff] }
  0x2c   :  { %293 = vperm.xlu1 %2489, %v59_v1   ;;  %289 = vperm.xlu0 %2487, %v58_v2   ;;  %v65_v26 = vld [vmem:[%s3518_s0 + $0x38] sm:$0xff]  ;;  %v2388_v27 = vpack.c.bf16 %v726_v25, %v725_v24  ;;  %v728_v29 = vld [vmem:[%s3521_s3 + $0x68] sm:$0xff]  ;;  %v66_v30 = vld [vmem:[%s3518_s0 + $0x40] sm:$0xff] }
  0x2d   :  { %2371 = vmatpush3.bf16.msra.mxu0 %v2368_v9  ;;  %2472 = vmatpush3.bf16.msra.mxu1 %v2368_v9  ;;  %v2392_v31 = vpack.c.bf16 %v728_v29, %v727_v28  ;;  %v729_v32 = vld [vmem:[%s3521_s3 + $0x70] sm:$0xff]  ;;  %v730_v33 = vld [vmem:[%s3521_s3 + $0x78] sm:$0xff]  ;;  %v67_v34 = vld [vmem:[%s3518_s0 + $0x48] sm:$0xff] }
  0x2e   :  { %2373 = vmatprep.subr.bf16.mxu0 %v2372_v11  ;;  %2465 = vmatprep.subr.bf16.mxu1 %v2372_v11  ;;  %v2396_v35 = vpack.c.bf16 %v730_v33, %v729_v32  ;;  %v68_v36 = vld [vmem:[%s3518_s0 + $0x50] sm:$0xff]  ;;  %v69_v37 = vld [vmem:[%s3518_s0 + $0x58] sm:$0xff]  ;;  %v70_v38 = vld [vmem:[%s3518_s0 + $0x60] sm:$0xff] }
  0x2f   :  { %v71_v39 = vld [vmem:[%s3518_s0 + $0x68] sm:$0xff]  ;;  %v72_v40 = vld [vmem:[%s3518_s0 + $0x70] sm:$0xff]  ;;  %v73_v41 = vld [vmem:[%s3518_s0 + $0x78] sm:$0xff] }
  0x30   :  { %2490 = vset.pattern.permute.xlu1 %v2735_v0  ;;  %297 = vperm.xlu0 %2487, %v60_v4   ;;  %v74_v42 = vld [vmem:[%s3518_s0 + $0x80] sm:$0xff]  ;;  %v75_v43 = vld [vmem:[%s3518_s0 + $0x88] sm:$0xff]  ;;  %v76_v44 = vld [vmem:[%s3518_s0 + $0x90] sm:$0xff] }
  0x31   :  { %103 = vperm.xlu1 %2490, %v60_v4   ;;  %2375 = vmatpush3.bf16.msra.mxu0 %v2372_v11  ;;  %v77_v45 = vld [vmem:[%s3518_s0 + $0x98] sm:$0xff]  ;;  %v78_v46 = vld [vmem:[%s3518_s0 + $0xa0] sm:$0xff]  ;;  %v79_v47 = vld [vmem:[%s3518_s0 + $0xa8] sm:$0xff] }
  0x32   :  { %2377 = vmatprep.subr.bf16.mxu0 %v2376_v15  ;;  %2473 = vmatpush3.bf16.msra.mxu1 %v2372_v11  ;;  %v80_v48 = vld [vmem:[%s3518_s0 + $0xb0] sm:$0xff]  ;;  %v81_v49 = vld [vmem:[%s3518_s0 + $0xb8] sm:$0xff]  ;;  %v82_v50 = vld [vmem:[%s3518_s0 + $0xc0] sm:$0xff] }
  0x33   :  { %2466 = vmatprep.subr.bf16.mxu1 %v2376_v15  ;;  %v83_v51 = vld [vmem:[%s3518_s0 + $0xc8] sm:$0xff]  ;;  %v84_v52 = vld [vmem:[%s3518_s0 + $0xd0] sm:$0xff]  ;;  %v85_v53 = vld [vmem:[%s3518_s0 + $0xd8] sm:$0xff] }
  0x34   :  { %301 = vperm.xlu0 %2487, %v61_v6   ;;  %v86_v54 = vld [vmem:[%s3518_s0 + $0xe0] sm:$0xff]  ;;  %v87_v55 = vld [vmem:[%s3518_s0 + $0xe8] sm:$0xff]  ;;  %v88_v56 = vld [vmem:[%s3518_s0 + $0xf0] sm:$0xff] }
  0x35   :  { %108 = vperm.xlu1 %2490, %v61_v6   ;;  %2379 = vmatpush3.bf16.msra.mxu0 %v2376_v15  ;;  %v89_v57 = vld [vmem:[%s3518_s0 + $0xf8] sm:$0xff]  ;;  %v2962_v60 = vld [vmem:[#allocation2] ss:$0 sm:$0xff]  ;;  %v2964_v61 = vld [vmem:[#allocation2 + $0x1] ss:$0 sm:$0xff] }
  0x36   :  { %2381 = vmatprep.subr.bf16.mxu0 %v2380_v19  ;;  %2474 = vmatpush3.bf16.msra.mxu1 %v2376_v15  ;;  %v2973_v4 = vld [vmem:[%s3520_s2] ss:$0 sm:$0xff] }
  0x37   :  { %2467 = vmatprep.subr.bf16.mxu1 %v2380_v19 }
  0x38   :  { %305 = vperm.xlu0 %2487, %v62_v14  }
  0x39   :  { %113 = vperm.xlu1 %2490, %v62_v14   ;;  %2383 = vmatpush3.bf16.msra.mxu0 %v2380_v19 }
  0x3a   :  { %2385 = vmatprep.subr.bf16.mxu0 %v2384_v23  ;;  %2475 = vmatpush3.bf16.msra.mxu1 %v2380_v19 }
  0x3b   :  { %2468 = vmatprep.subr.bf16.mxu1 %v2384_v23 }
  0x3c   :  { %309 = vperm.xlu0 %2487, %v63_v18  }
  0x3d   :  { %118 = vperm.xlu1 %2490, %v63_v18   ;;  %2387 = vmatpush3.bf16.msra.mxu0 %v2384_v23 }
  0x3e   :  { %2389 = vmatprep.subr.bf16.mxu0 %v2388_v27  ;;  %2476 = vmatpush3.bf16.msra.mxu1 %v2384_v23 }
  0x3f   :  { %2469 = vmatprep.subr.bf16.mxu1 %v2388_v27 }
  0x40   :  { %313 = vperm.xlu0 %2487, %v64_v22  }
  0x41   :  { %123 = vperm.xlu1 %2490, %v64_v22   ;;  %2391 = vmatpush3.bf16.msra.mxu0 %v2388_v27 }
  0x42   :  { %2393 = vmatprep.subr.bf16.mxu0 %v2392_v31  ;;  %2477 = vmatpush3.bf16.msra.mxu1 %v2388_v27 }
  0x43   :  { %2470 = vmatprep.subr.bf16.mxu1 %v2392_v31 }
  0x44   :  { %317 = vperm.xlu0 %2487, %v65_v26  }
  0x45   :  { %128 = vperm.xlu1 %2490, %v65_v26   ;;  %2395 = vmatpush3.bf16.msra.mxu0 %v2392_v31 }
  0x46   :  { %2397 = vmatprep.subr.bf16.mxu0 %v2396_v35  ;;  %2478 = vmatpush3.bf16.msra.mxu1 %v2392_v31 }
  0x47   :  { %2471 = vmatprep.subr.bf16.mxu1 %v2396_v35 }
  0x48   :  { %321 = vperm.xlu0 %2487, %v66_v30  }
  0x49   :  { %133 = vperm.xlu1 %2490, %v66_v30   ;;  %2399 = vmatpush3.bf16.msra.mxu0 %v2396_v35 }
  0x4a   :  { %2479 = vmatpush3.bf16.msra.mxu1 %v2396_v35 }
  0x4c   :  { %325 = vperm.xlu0 %2487, %v67_v34  }
  0x4d   :  { %138 = vperm.xlu1 %2490, %v67_v34  }
  0x50   :  { %329 = vperm.xlu0 %2487, %v68_v36  }
  0x51   :  { %143 = vperm.xlu1 %2490, %v68_v36  }
  0x54   :  { %333 = vperm.xlu0 %2487, %v69_v37  }
  0x55   :  { %148 = vperm.xlu1 %2490, %v69_v37  }
  0x58   :  { %337 = vperm.xlu0 %2487, %v70_v38  }
  0x59   :  { %153 = vperm.xlu1 %2490, %v70_v38  }
  0x5c   :  { %341 = vperm.xlu0 %2487, %v71_v39  }
  0x5d   :  { %158 = vperm.xlu1 %2490, %v71_v39   ;;  %v1155_v39 = vld [vmem:[%s3523_s5] sm:$0xff] }
  0x60   :  { %345 = vperm.xlu0 %2487, %v72_v40  }
  0x61   :  { %163 = vperm.xlu1 %2490, %v72_v40   ;;  %v1156_v40 = vld [vmem:[%s3523_s5 + $0x8] sm:$0xff] }
  0x64   :  { %349 = vperm.xlu0 %2487, %v73_v41  }
  0x65   :  { %168 = vperm.xlu1 %2490, %v73_v41   ;;  %v3002_v41 = vpack.c.bf16 %v1156_v40, %v1155_v39 }
  0x67   :  { %2401 = vmatprep.subr.bf16.mxu1 %v3002_v41 }
  0x68   :  { %353 = vperm.xlu0 %2487, %v74_v42  }
  0x69   :  { %173 = vperm.xlu1 %2490, %v74_v42  }
  0x6c   :  { %357 = vperm.xlu0 %2487, %v75_v43  }
  0x6d   :  { %178 = vperm.xlu1 %2490, %v75_v43  }
  0x70   :  { %361 = vperm.xlu0 %2487, %v76_v44  }
  0x71   :  { %183 = vperm.xlu1 %2490, %v76_v44  }
  0x74   :  { %365 = vperm.xlu0 %2487, %v77_v45  }
  0x75   :  { %188 = vperm.xlu1 %2490, %v77_v45  }
  0x78   :  { %369 = vperm.xlu0 %2487, %v78_v46  }
  0x79   :  { %193 = vperm.xlu1 %2490, %v78_v46  }
  0x7c   :  { %373 = vperm.xlu0 %2487, %v79_v47  }
  0x7d   :  { %198 = vperm.xlu1 %2490, %v79_v47  }
  0x80   :  { %377 = vperm.xlu0 %2487, %v80_v48  }
  0x81   :  { %203 = vperm.xlu1 %2490, %v80_v48  }
  0x84   :  { %381 = vperm.xlu0 %2487, %v81_v49  }
  0x85   :  { %208 = vperm.xlu1 %2490, %v81_v49  }
  0x88   :  { %385 = vperm.xlu0 %2487, %v82_v50  }
  0x89   :  { %213 = vperm.xlu1 %2490, %v82_v50  }
  0x8c   :  { %389 = vperm.xlu0 %2487, %v83_v51  }
  0x8d   :  { %218 = vperm.xlu1 %2490, %v83_v51  }
  0x90   :  { %393 = vperm.xlu0 %2487, %v84_v52  }
  0x91   :  { %223 = vperm.xlu1 %2490, %v84_v52  }
  0x94   :  { %397 = vperm.xlu0 %2487, %v85_v53  }
  0x95   :  { %228 = vperm.xlu1 %2490, %v85_v53  }
  0x98   :  { %401 = vperm.xlu0 %2487, %v86_v54  }
  0x99   :  { %233 = vperm.xlu1 %2490, %v86_v54  }
  0x9c   :  { %405 = vperm.xlu0 %2487, %v87_v55  }
  0x9d   :  { %238 = vperm.xlu1 %2490, %v87_v55  }
  0xa0   :  { %409 = vperm.xlu0 %2487, %v88_v56  }
  0xa1   :  { %243 = vperm.xlu1 %2490, %v88_v56  }
  0xa4   :  { %413 = vperm.xlu0 %2487, %v89_v57  }
  0xa5   :  { %248 = vperm.xlu1 %2490, %v89_v57  }
  0xa6   :  { %v99_v58 = vpop.permute.xlu1 %98  ;;  %v94_v59 = vpop.permute.xlu0 %93 }
  0xa7   :  { %v256_v0 = vmul.f32 %v2962_v60, %v99_v58  ;;  %v255_v1 = vmul.f32 %v2962_v60, %v94_v59 }
  0xab   :  { %v294_v62 = vpop.permute.xlu1 %293  ;;  %v290_v63 = vpop.permute.xlu0 %289 }
  0xac   :  { %v421_v2 = vmul.f32 %v2964_v61, %v294_v62  ;;  %v420_v3 = vmul.f32 %v2964_v61, %v290_v63 }
  0xae   :  { %v453_v5 = vadd.f32 %v421_v2, %v256_v0  ;;  %v452_v6 = vadd.f32 %v420_v3, %v255_v1 }
  0xaf   :  { %v298_v7 = vpop.permute.xlu0 %297 }
  0xb0   :  { %v492_v8 = vadd.f32 %v2973_v4, %v453_v5  ;;  %v422_v9 = vmul.f32 %v2964_v61, %v298_v7  ;;  %v104_v10 = vpop.permute.xlu1 %103  ;;  %v491_v11 = vadd.f32 %v2973_v4, %v452_v6 }
  0xb1   :  { %v257_v12 = vmul.f32 %v2962_v60, %v104_v10 }
  0xb2   :  { %v556_v13 = vmin.f32 %v492_v8, 0.0  ;;  %v555_v14 = vmin.f32 %v491_v11, 0.0  ;;  %vm523_vm0 = vcmp.gt.f32.partialorder %v491_v11, 0.0  ;;  %vm524_vm1 = vcmp.gt.f32.partialorder %v492_v8, 0.0 }
  0xb3   :  { %v454_v15 = vadd.f32 %v422_v9, %v257_v12  ;;  %v302_v16 = vpop.permute.xlu0 %301 }
  0xb4   :  { %v423_v17 = vmul.f32 %v2964_v61, %v302_v16  ;;  %v109_v18 = vpop.permute.xlu1 %108  ;;  %v587_v19 = vmul.f32 1.442695, %v555_v14  ;;  %v589_v20 = vmul.f32 1.442695, %v556_v13 }
  0xb5   :  { %v2981_v21 = vadd.f32 %v2973_v4, %v454_v15  ;;  %v258_v22 = vmul.f32 %v2962_v60, %v109_v18 }
  0xb6   :  { %2491 = vpow2.f32 %v587_v19 }
  0xb7   :  { %v557_v23 = vmin.f32 %v2981_v21, 0.0  ;;  %v455_v24 = vadd.f32 %v423_v17, %v258_v22  ;;  %v306_v25 = vpop.permute.xlu0 %305  ;;  %2493 = vpow2.f32 %v589_v20  ;;  %vm525_vm2 = vcmp.gt.f32.partialorder %v2981_v21, 0.0 }
  0xb8   :  { %v424_v26 = vmul.f32 %v2964_v61, %v306_v25  ;;  %v114_v27 = vpop.permute.xlu1 %113 }
  0xb9   :  { %v2987_v28 = vadd.f32 %v2973_v4, %v455_v24  ;;  %v259_v29 = vmul.f32 %v2962_v60, %v114_v27  ;;  %v591_v30 = vmul.f32 1.442695, %v557_v23 }
  0xbb   :  { %v558_v31 = vmin.f32 %v2987_v28, 0.0  ;;  %v456_v32 = vadd.f32 %v424_v26, %v259_v29  ;;  %v310_v33 = vpop.permute.xlu0 %309  ;;  %2495 = vpow2.f32 %v591_v30  ;;  %vm526_vm3 = vcmp.gt.f32.partialorder %v2987_v28, 0.0 }
  0xbc   :  { %v425_v34 = vmul.f32 %v2964_v61, %v310_v33  ;;  %v119_v35 = vpop.permute.xlu1 %118 }
  0xbd   :  { %v2993_v36 = vadd.f32 %v2973_v4, %v456_v32  ;;  %v260_v37 = vmul.f32 %v2962_v60, %v119_v35  ;;  %v593_v38 = vmul.f32 1.442695, %v558_v31 }
  0xbf   :  { %v559_v42 = vmin.f32 %v2993_v36, 0.0  ;;  %v457_v43 = vadd.f32 %v425_v34, %v260_v37  ;;  %v314_v44 = vpop.permute.xlu0 %313  ;;  %2497 = vpow2.f32 %v593_v38  ;;  %vm527_vm4 = vcmp.gt.f32.partialorder %v2993_v36, 0.0 }
  0xc0   :  { %v2492_v45 = vpop.eup %2491  ;;  %v426_v46 = vmul.f32 %v2964_v61, %v314_v44  ;;  %v124_v47 = vpop.permute.xlu1 %123 }
  0xc1   :  { %v2494_v48 = vpop.eup %2493  ;;  %v3008_v49 = vadd.f32 %v2973_v4, %v457_v43  ;;  %v261_v50 = vmul.f32 %v2962_v60, %v124_v47  ;;  %v1885_v51 = vadd.f32 -1.0, %v2492_v45  ;;  %v595_v52 = vmul.f32 1.442695, %v559_v42 }
  0xc2   :  { %v1886_v53 = vadd.f32 -1.0, %v2494_v48 }
  0xc3   :  { %v560_v54 = vmin.f32 %v3008_v49, 0.0  ;;  %v458_v55 = vadd.f32 %v426_v46, %v261_v50  ;;  %v318_v56 = vpop.permute.xlu0 %317  ;;  %v683_v57 = vsel %vm523_vm0, %v491_v11, %v1885_v51  ;;  %2499 = vpow2.f32 %v595_v52 }
  0xc4   :  { %v427_v58 = vmul.f32 %v2964_v61, %v318_v56  ;;  %v129_v59 = vpop.permute.xlu1 %128  ;;  %2160 = vmatprep.mubr.f32.mxu0 %v683_v57  ;;  %v684_v62 = vsel %vm524_vm1, %v492_v8, %v1886_v53  ;;  %vm528_vm5 = vcmp.gt.f32.partialorder %v3008_v49, 0.0 }
  0xc5   :  { %v2496_v63 = vpop.eup %2495  ;;  %v3014_v0 = vadd.f32 %v2973_v4, %v458_v55  ;;  %v262_v1 = vmul.f32 %v2962_v60, %v129_v59  ;;  %2161 = vmatmul.mubr.f32.vlgmr.msra.gmra.mrb[0].mxu0 %v684_v62  ;;  %v597_v2 = vmul.f32 1.442695, %v560_v54 }
  0xc6   :  { %v1887_v3 = vadd.f32 -1.0, %v2496_v63 }
  0xc7   :  { %v561_v5 = vmin.f32 %v3014_v0, 0.0  ;;  %v459_v6 = vadd.f32 %v427_v58, %v262_v1  ;;  %v322_v7 = vpop.permute.xlu0 %321  ;;  %2501 = vpow2.f32 %v597_v2  ;;  %vm529_vm6 = vcmp.gt.f32.partialorder %v3014_v0, 0.0 }
  0xc8   :  { %v428_v9 = vmul.f32 %v2964_v61, %v322_v7  ;;  %v134_v10 = vpop.permute.xlu1 %133  ;;  %v685_v8 = vsel %vm525_vm2, %v2981_v21, %v1887_v3 }
  0xc9   :  { %v2498_v11 = vpop.eup %2497  ;;  %v3022_v12 = vadd.f32 %v2973_v4, %v459_v6  ;;  %v263_v13 = vmul.f32 %v2962_v60, %v134_v10  ;;  %2163 = vmatprep.mubr.f32.mxu0 %v685_v8  ;;  %v599_v14 = vmul.f32 1.442695, %v561_v5 }
  0xca   :  { %v1888_v15 = vadd.f32 -1.0, %v2498_v11 }
  0xcb   :  { %v562_v16 = vmin.f32 %v3022_v12, 0.0  ;;  %v460_v17 = vadd.f32 %v428_v9, %v263_v13  ;;  %v326_v18 = vpop.permute.xlu0 %325  ;;  %2503 = vpow2.f32 %v599_v14  ;;  %vm530_vm7 = vcmp.gt.f32.partialorder %v3022_v12, 0.0 }
  0xcc   :  { %v429_v19 = vmul.f32 %v2964_v61, %v326_v18  ;;  %v139_v20 = vpop.permute.xlu1 %138  ;;  %v686_v21 = vsel %vm526_vm3, %v2987_v28, %v1888_v15 }
  0xcd   :  { %v2500_v22 = vpop.eup %2499  ;;  %v3030_v23 = vadd.f32 %v2973_v4, %v460_v17  ;;  %v264_v24 = vmul.f32 %v2962_v60, %v139_v20  ;;  %2164 = vmatmul.mubr.f32.gmra.mrb[2].mxu0 %v686_v21  ;;  %v601_v25 = vmul.f32 1.442695, %v562_v16 }
  0xce   :  { %v1889_v26 = vadd.f32 -1.0, %v2500_v22 }
  0xcf   :  { %v563_v27 = vmin.f32 %v3030_v23, 0.0  ;;  %v461_v29 = vadd.f32 %v429_v19, %v264_v24  ;;  %v330_v30 = vpop.permute.xlu0 %329  ;;  %2505 = vpow2.f32 %v601_v25  ;;  %vm531_vm8 = vcmp.gt.f32.partialorder %v3030_v23, 0.0 }
  0xd0   :  { %v430_v31 = vmul.f32 %v2964_v61, %v330_v30  ;;  %v144_v32 = vpop.permute.xlu1 %143  ;;  %v687_v28 = vsel %vm527_vm4, %v2993_v36, %v1889_v26 }
  0xd1   :  { %v2502_v33 = vpop.eup %2501  ;;  %v3038_v34 = vadd.f32 %v2973_v4, %v461_v29  ;;  %v265_v35 = vmul.f32 %v2962_v60, %v144_v32  ;;  %2166 = vmatprep.mubr.f32.mxu0 %v687_v28  ;;  %v603_v37 = vmul.f32 1.442695, %v563_v27 }
  0xd2   :  { %v1890_v38 = vadd.f32 -1.0, %v2502_v33 }
  0xd3   :  { %v564_v39 = vmin.f32 %v3038_v34, 0.0  ;;  %v462_v40 = vadd.f32 %v430_v31, %v265_v35  ;;  %v334_v42 = vpop.permute.xlu0 %333  ;;  %2507 = vpow2.f32 %v603_v37  ;;  %vm532_vm9 = vcmp.gt.f32.partialorder %v3038_v34, 0.0 }
  0xd4   :  { %v431_v43 = vmul.f32 %v2964_v61, %v334_v42  ;;  %v149_v44 = vpop.permute.xlu1 %148  ;;  %v688_v36 = vsel %vm528_vm5, %v3008_v49, %v1890_v38 }
  0xd5   :  { %v2504_v45 = vpop.eup %2503  ;;  %v3046_v46 = vadd.f32 %v2973_v4, %v462_v40  ;;  %v266_v47 = vmul.f32 %v2962_v60, %v149_v44  ;;  %2167 = vmatmul.mubr.f32.gmra.mrb[4].mxu0 %v688_v36  ;;  %v605_v48 = vmul.f32 1.442695, %v564_v39 }
  0xd6   :  { %v1891_v50 = vadd.f32 -1.0, %v2504_v45 }
  0xd7   :  { %v565_v51 = vmin.f32 %v3046_v46, 0.0  ;;  %v463_v52 = vadd.f32 %v431_v43, %v266_v47  ;;  %v338_v53 = vpop.permute.xlu0 %337  ;;  %2509 = vpow2.f32 %v605_v48  ;;  %vm533_vm10 = vcmp.gt.f32.partialorder %v3046_v46, 0.0 }
  0xd8   :  { %v432_v54 = vmul.f32 %v2964_v61, %v338_v53  ;;  %v154_v55 = vpop.permute.xlu1 %153  ;;  %v689_v49 = vsel %vm529_vm6, %v3014_v0, %v1891_v50 }
  0xd9   :  { %v2506_v56 = vpop.eup %2505  ;;  %v3054_v57 = vadd.f32 %v2973_v4, %v463_v52  ;;  %v267_v58 = vmul.f32 %v2962_v60, %v154_v55  ;;  %2169 = vmatprep.mubr.f32.mxu0 %v689_v49  ;;  %v607_v59 = vmul.f32 1.442695, %v565_v51 }
  0xda   :  { %v1892_v62 = vadd.f32 -1.0, %v2506_v56 }
  0xdb   :  { %v566_v63 = vmin.f32 %v3054_v57, 0.0  ;;  %v464_v1 = vadd.f32 %v432_v54, %v267_v58  ;;  %v342_v2 = vpop.permute.xlu0 %341  ;;  %2511 = vpow2.f32 %v607_v59  ;;  %vm534_vm11 = vcmp.gt.f32.partialorder %v3054_v57, 0.0 }
  0xdc   :  { %v433_v3 = vmul.f32 %v2964_v61, %v342_v2  ;;  %v159_v5 = vpop.permute.xlu1 %158  ;;  %v690_v0 = vsel %vm530_vm7, %v3022_v12, %v1892_v62 }
  0xdd   :  { %v2508_v6 = vpop.eup %2507  ;;  %v3062_v7 = vadd.f32 %v2973_v4, %v464_v1  ;;  %v268_v9 = vmul.f32 %v2962_v60, %v159_v5  ;;  %2170 = vmatmul.mubr.f32.gmra.mrb[6].mxu0 %v690_v0  ;;  %v609_v10 = vmul.f32 1.442695, %v566_v63 }
  0xde   :  { %v1893_v8 = vadd.f32 -1.0, %v2508_v6 }
  0xdf   :  { %v567_v11 = vmin.f32 %v3062_v7, 0.0  ;;  %v465_v13 = vadd.f32 %v433_v3, %v268_v9  ;;  %v346_v14 = vpop.permute.xlu0 %345  ;;  %2513 = vpow2.f32 %v609_v10  ;;  %vm535_vm12 = vcmp.gt.f32.partialorder %v3062_v7, 0.0 }
  0xe0   :  { %v434_v15 = vmul.f32 %v2964_v61, %v346_v14  ;;  %v164_v16 = vpop.permute.xlu1 %163  ;;  %v691_v12 = vsel %vm531_vm8, %v3030_v23, %v1893_v8 }
  0xe1   :  { %v2510_v17 = vpop.eup %2509  ;;  %v3070_v18 = vadd.f32 %v2973_v4, %v465_v13  ;;  %v269_v19 = vmul.f32 %v2962_v60, %v164_v16  ;;  %2172 = vmatprep.mubr.f32.mxu0 %v691_v12  ;;  %v611_v20 = vmul.f32 1.442695, %v567_v11 }
  0xe2   :  { %v1894_v21 = vadd.f32 -1.0, %v2510_v17 }
  0xe3   :  { %v568_v22 = vmin.f32 %v3070_v18, 0.0  ;;  %v466_v24 = vadd.f32 %v434_v15, %v269_v19  ;;  %v350_v25 = vpop.permute.xlu0 %349  ;;  %2515 = vpow2.f32 %v611_v20  ;;  %vm536_vm13 = vcmp.gt.f32.partialorder %v3070_v18, 0.0 }
  0xe4   :  { %v435_v26 = vmul.f32 %v2964_v61, %v350_v25  ;;  %v169_v27 = vpop.permute.xlu1 %168  ;;  %v692_v23 = vsel %vm532_vm9, %v3038_v34, %v1894_v21 }
  0xe5   :  { %v2512_v29 = vpop.eup %2511  ;;  %v3078_v30 = vadd.f32 %v2973_v4, %v466_v24  ;;  %v270_v31 = vmul.f32 %v2962_v60, %v169_v27  ;;  %2173 = vmatmul.mubr.f32.gmra.mrb[8].mxu0 %v692_v23  ;;  %v613_v32 = vmul.f32 1.442695, %v568_v22 }
  0xe6   :  { %v1895_v28 = vadd.f32 -1.0, %v2512_v29 }
  0xe7   :  { %v569_v33 = vmin.f32 %v3078_v30, 0.0  ;;  %v467_v35 = vadd.f32 %v435_v26, %v270_v31  ;;  %v354_v37 = vpop.permute.xlu0 %353  ;;  %2517 = vpow2.f32 %v613_v32  ;;  %vm537_vm14 = vcmp.gt.f32.partialorder %v3078_v30, 0.0 }
  0xe8   :  { %v436_v38 = vmul.f32 %v2964_v61, %v354_v37  ;;  %v174_v39 = vpop.permute.xlu1 %173  ;;  %v693_v34 = vsel %vm533_vm10, %v3046_v46, %v1895_v28 }
  0xe9   :  { %v2514_v40 = vpop.eup %2513  ;;  %v3086_v42 = vadd.f32 %v2973_v4, %v467_v35  ;;  %v271_v43 = vmul.f32 %v2962_v60, %v174_v39  ;;  %2175 = vmatprep.mubr.f32.mxu0 %v693_v34  ;;  %v615_v44 = vmul.f32 1.442695, %v569_v33 }
  0xea   :  { %v1896_v36 = vadd.f32 -1.0, %v2514_v40 }
  0xeb   :  { %v570_v45 = vmin.f32 %v3086_v42, 0.0  ;;  %v468_v47 = vadd.f32 %v436_v38, %v271_v43  ;;  %v358_v48 = vpop.permute.xlu0 %357  ;;  %2519 = vpow2.f32 %v615_v44  ;;  %vm538_vm15 = vcmp.gt.f32.partialorder %v3086_v42, 0.0 }
  0xec   :  { %v437_v50 = vmul.f32 %v2964_v61, %v358_v48  ;;  %v179_v51 = vpop.permute.xlu1 %178  ;;  %v694_v46 = vsel %vm534_vm11, %v3054_v57, %v1896_v36  ;;  %v1158_v36 = vld [vmem:[%s3523_s5 + $0x18] sm:$0xff] }
  0xed   :  { %v2516_v52 = vpop.eup %2515  ;;  %v272_v53 = vmul.f32 %v2962_v60, %v179_v51  ;;  %2176 = vmatmul.mubr.f32.gmra.mrb[10].mxu0 %v694_v46  ;;  %v617_v54 = vmul.f32 1.442695, %v570_v45  ;;  %v3095_v55 = vadd.f32 %v2973_v4, %v468_v47 }
  0xee   :  { %v1897_v49 = vadd.f32 -1.0, %v2516_v52 }
  0xef   :  { %v469_v56 = vadd.f32 %v437_v50, %v272_v53  ;;  %v362_v58 = vpop.permute.xlu0 %361  ;;  %2521 = vpow2.f32 %v617_v54  ;;  %v571_v59 = vmin.f32 %v3095_v55, 0.0  ;;  %vm539_vm0 = vcmp.gt.f32.partialorder %v3095_v55, 0.0 }
  0xf0   :  { %v438_v62 = vmul.f32 %v2964_v61, %v362_v58  ;;  %v184_v63 = vpop.permute.xlu1 %183  ;;  %v695_v57 = vsel %vm535_vm12, %v3062_v7, %v1897_v49 }
  0xf1   :  { %v2518_v1 = vpop.eup %2517  ;;  %v3102_v2 = vadd.f32 %v2973_v4, %v469_v56  ;;  %v273_v3 = vmul.f32 %v2962_v60, %v184_v63  ;;  %2178 = vmatprep.mubr.f32.mxu0 %v695_v57  ;;  %v619_v5 = vmul.f32 1.442695, %v571_v59  ;;  %v1160_v59 = vld [vmem:[%s3523_s5 + $0x28] sm:$0xff] }
  0xf2   :  { %v1898_v0 = vadd.f32 -1.0, %v2518_v1 }
  0xf3   :  { %v572_v6 = vmin.f32 %v3102_v2, 0.0  ;;  %v470_v9 = vadd.f32 %v438_v62, %v273_v3  ;;  %v366_v10 = vpop.permute.xlu0 %365  ;;  %2523 = vpow2.f32 %v619_v5  ;;  %vm540_vm1 = vcmp.gt.f32.partialorder %v3102_v2, 0.0 }
  0xf4   :  { %v439_v8 = vmul.f32 %v2964_v61, %v366_v10  ;;  %v189_v11 = vpop.permute.xlu1 %188  ;;  %v696_v7 = vsel %vm536_vm13, %v3070_v18, %v1898_v0 }
  0xf5   :  { %v2520_v13 = vpop.eup %2519  ;;  %v3110_v14 = vadd.f32 %v2973_v4, %v470_v9  ;;  %v274_v15 = vmul.f32 %v2962_v60, %v189_v11  ;;  %2179 = vmatmul.mubr.f32.gmra.mrb[12].mxu0 %v696_v7  ;;  %v621_v16 = vmul.f32 1.442695, %v572_v6 }
  0xf6   :  { %v1899_v12 = vadd.f32 -1.0, %v2520_v13 }
  0xf7   :  { %v573_v17 = vmin.f32 %v3110_v14, 0.0  ;;  %v471_v19 = vadd.f32 %v439_v8, %v274_v15  ;;  %v370_v20 = vpop.permute.xlu0 %369  ;;  %2525 = vpow2.f32 %v621_v16  ;;  %vm541_vm2 = vcmp.gt.f32.partialorder %v3110_v14, 0.0 }
  0xf8   :  { %v440_v21 = vmul.f32 %v2964_v61, %v370_v20  ;;  %v194_v22 = vpop.permute.xlu1 %193  ;;  %v697_v18 = vsel %vm537_vm14, %v3078_v30, %v1899_v12 }
  0xf9   :  { %v2522_v24 = vpop.eup %2521  ;;  %v3118_v25 = vadd.f32 %v2973_v4, %v471_v19  ;;  %v275_v26 = vmul.f32 %v2962_v60, %v194_v22  ;;  %2181 = vmatprep.mubr.f32.mxu0 %v697_v18  ;;  %v623_v27 = vmul.f32 1.442695, %v573_v17 }
  0xfa   :  { %v1900_v23 = vadd.f32 -1.0, %v2522_v24 }
  0xfb   :  { %v574_v29 = vmin.f32 %v3118_v25, 0.0  ;;  %v472_v31 = vadd.f32 %v440_v21, %v275_v26  ;;  %v374_v32 = vpop.permute.xlu0 %373  ;;  %2527 = vpow2.f32 %v623_v27  ;;  %vm542_vm3 = vcmp.gt.f32.partialorder %v3118_v25, 0.0 }
  0xfc   :  { %v441_v28 = vmul.f32 %v2964_v61, %v374_v32  ;;  %v199_v33 = vpop.permute.xlu1 %198  ;;  %v698_v30 = vsel %vm538_vm15, %v3086_v42, %v1900_v23  ;;  %v1157_v42 = vld [vmem:[%s3523_s5 + $0x10] sm:$0xff] }
  0xfd   :  { %v2524_v35 = vpop.eup %2523  ;;  %v3126_v37 = vadd.f32 %v2973_v4, %v472_v31  ;;  %v276_v38 = vmul.f32 %v2962_v60, %v199_v33  ;;  %2182 = vmatmul.mubr.f32.gmra.mrb[14].mxu0 %v698_v30  ;;  %v625_v39 = vmul.f32 1.442695, %v574_v29  ;;  %v2404_v54 = vpack.c.bf16 %v1158_v36, %v1157_v42 }
  0xfe   :  { %v1901_v34 = vadd.f32 -1.0, %v2524_v35 }
  0xff   :  { %v575_v40 = vmin.f32 %v3126_v37, 0.0  ;;  %v473_v43 = vadd.f32 %v441_v28, %v276_v38  ;;  %v378_v44 = vpop.permute.xlu0 %377  ;;  %2529 = vpow2.f32 %v625_v39  ;;  %vm543_vm4 = vcmp.gt.f32.partialorder %v3126_v37, 0.0 }
 0x100   :  { %v442_v45 = vmul.f32 %v2964_v61, %v378_v44  ;;  %v204_v47 = vpop.permute.xlu1 %203  ;;  %v699_v48 = vsel %vm539_vm0, %v3095_v55, %v1901_v34  ;;  %v1159_v55 = vld [vmem:[%s3523_s5 + $0x20] sm:$0xff] }
 0x101   :  { %v2526_v50 = vpop.eup %2525  ;;  %v3140_v51 = vadd.f32 %v2973_v4, %v473_v43  ;;  %v277_v46 = vmul.f32 %v2962_v60, %v204_v47  ;;  %2184 = vmatprep.mubr.f32.mxu1 %v699_v48  ;;  %v627_v52 = vmul.f32 1.442695, %v575_v40  ;;  %v2408_v9 = vpack.c.bf16 %v1160_v59, %v1159_v55 }
 0x102   :  { %v1902_v53 = vadd.f32 -1.0, %v2526_v50 }
 0x103   :  { %v576_v49 = vmin.f32 %v3140_v51, 0.0  ;;  %v474_v56 = vadd.f32 %v442_v45, %v277_v46  ;;  %v382_v58 = vpop.permute.xlu0 %381  ;;  %2531 = vpow2.f32 %v627_v52  ;;  %vm544_vm5 = vcmp.gt.f32.partialorder %v3140_v51, 0.0 }
 0x104   :  { %v443_v62 = vmul.f32 %v2964_v61, %v382_v58  ;;  %v209_v63 = vpop.permute.xlu1 %208  ;;  %v700_v57 = vsel %vm540_vm1, %v3102_v2, %v1902_v53 }
 0x105   :  { %v2528_v1 = vpop.eup %2527  ;;  %v3154_v3 = vadd.f32 %v2973_v4, %v474_v56  ;;  %v278_v5 = vmul.f32 %v2962_v60, %v209_v63  ;;  %2185 = vmatmul.mubr.f32.vlgmr.msra.gmra.mrb[0].mxu1 %v700_v57  ;;  %v629_v0 = vmul.f32 1.442695, %v576_v49  ;;  %v1161_v57 = vld [vmem:[%s3523_s5 + $0x30] sm:$0xff] }
 0x106   :  { %v1903_v6 = vadd.f32 -1.0, %v2528_v1  ;;  %2403 = vmatpush3.bf16.msra.mxu1 %v3002_v41  ;;  %v1162_v1 = vld [vmem:[%s3523_s5 + $0x38] sm:$0xff] }
 0x107   :  { %v577_v10 = vmin.f32 %v3154_v3, 0.0  ;;  %v475_v8 = vadd.f32 %v443_v62, %v278_v5  ;;  %v386_v11 = vpop.permute.xlu0 %385  ;;  %2533 = vpow2.f32 %v629_v0  ;;  %2405 = vmatprep.subr.bf16.mxu1 %v2404_v54  ;;  %vm545_vm6 = vcmp.gt.f32.partialorder %v3154_v3, 0.0 }
 0x108   :  { %v444_v2 = vmul.f32 %v2964_v61, %v386_v11  ;;  %v214_v7 = vpop.permute.xlu1 %213  ;;  %v701_v13 = vsel %vm541_vm2, %v3110_v14, %v1903_v6  ;;  %v2412_v0 = vpack.c.bf16 %v1162_v1, %v1161_v57 }
 0x109   :  { %v2530_v15 = vpop.eup %2529  ;;  %v3163_v16 = vadd.f32 %v2973_v4, %v475_v8  ;;  %v279_v41 = vmul.f32 %v2962_v60, %v214_v7  ;;  %2187 = vmatprep.mubr.f32.mxu1 %v701_v13  ;;  %v631_v12 = vmul.f32 1.442695, %v577_v10 }
 0x10a   :  { %v1904_v17 = vadd.f32 -1.0, %v2530_v15  ;;  %2407 = vmatpush3.bf16.msra.mxu1 %v2404_v54 }
 0x10b   :  { %v578_v19 = vmin.f32 %v3163_v16, 0.0  ;;  %v476_v20 = vadd.f32 %v444_v2, %v279_v41  ;;  %v390_v21 = vpop.permute.xlu0 %389  ;;  %2535 = vpow2.f32 %v631_v12  ;;  %2409 = vmatprep.subr.bf16.mxu1 %v2408_v9  ;;  %vm546_vm7 = vcmp.gt.f32.partialorder %v3163_v16, 0.0  ;;  %v1163_v41 = vld [vmem:[%s3523_s5 + $0x40] sm:$0xff]  ;;  %v1164_v12 = vld [vmem:[%s3523_s5 + $0x48] sm:$0xff] }
 0x10c   :  { %v445_v14 = vmul.f32 %v2964_v61, %v390_v21  ;;  %v219_v22 = vpop.permute.xlu1 %218  ;;  %v702_v18 = vsel %vm542_vm3, %v3118_v25, %v1904_v17 }
 0x10d   :  { %v2532_v24 = vpop.eup %2531  ;;  %v3171_v26 = vadd.f32 %v2973_v4, %v476_v20  ;;  %v280_v27 = vmul.f32 %v2962_v60, %v219_v22  ;;  %2188 = vmatmul.mubr.f32.gmra.mrb[2].mxu1 %v702_v18  ;;  %v633_v23 = vmul.f32 1.442695, %v578_v19 }
 0x10e   :  { %v1905_v29 = vadd.f32 -1.0, %v2532_v24  ;;  %2411 = vmatpush3.bf16.msra.mxu1 %v2408_v9 }
 0x10f   :  { %v579_v31 = vmin.f32 %v3171_v26, 0.0  ;;  %v477_v32 = vadd.f32 %v445_v14, %v280_v27  ;;  %v394_v28 = vpop.permute.xlu0 %393  ;;  %2537 = vpow2.f32 %v633_v23  ;;  %2413 = vmatprep.subr.bf16.mxu1 %v2412_v0  ;;  %vm547_vm8 = vcmp.gt.f32.partialorder %v3171_v26, 0.0 }
 0x110   :  { %v446_v33 = vmul.f32 %v2964_v61, %v394_v28  ;;  %v224_v25 = vpop.permute.xlu1 %223  ;;  %v703_v30 = vsel %vm543_vm4, %v3126_v37, %v1905_v29 }
 0x111   :  { %v2534_v35 = vpop.eup %2533  ;;  %v3179_v38 = vadd.f32 %v2973_v4, %v477_v32  ;;  %v281_v39 = vmul.f32 %v2962_v60, %v224_v25  ;;  %2190 = vmatprep.mubr.f32.mxu1 %v703_v30  ;;  %v635_v34 = vmul.f32 1.442695, %v579_v31  ;;  %v1165_v31 = vld [vmem:[%s3523_s5 + $0x50] sm:$0xff]  ;;  %v1166_v32 = vld [vmem:[%s3523_s5 + $0x58] sm:$0xff] }
 0x112   :  { %v1906_v40 = vadd.f32 -1.0, %v2534_v35  ;;  %2415 = vmatpush3.bf16.msra.mxu1 %v2412_v0 }
 0x113   :  { %v580_v43 = vmin.f32 %v3179_v38, 0.0  ;;  %v478_v44 = vadd.f32 %v446_v33, %v281_v39  ;;  %v398_v42 = vpop.permute.xlu0 %397  ;;  %2539 = vpow2.f32 %v635_v34  ;;  %v2420_v33 = vpack.c.bf16 %v1166_v32, %v1165_v31  ;;  %v1598_v32 = vld [vmem:[#allocation4 + $0x18] sm:$0xff] }
 0x114   :  { %v447_v36 = vmul.f32 %v2964_v61, %v398_v42  ;;  %v229_v45 = vpop.permute.xlu1 %228  ;;  %v704_v37 = vsel %vm544_vm5, %v3140_v51, %v1906_v40  ;;  %vm548_vm9 = vcmp.gt.f32.partialorder %v3179_v38, 0.0 }
 0x115   :  { %v2536_v47 = vpop.eup %2535  ;;  %v3187_v48 = vadd.f32 %v2973_v4, %v478_v44  ;;  %v282_v50 = vmul.f32 %v2962_v60, %v229_v45  ;;  %2191 = vmatmul.mubr.f32.gmra.mrb[4].mxu1 %v704_v37  ;;  %v637_v46 = vmul.f32 1.442695, %v580_v43  ;;  %v1168_v45 = vld [vmem:[%s3523_s5 + $0x68] sm:$0xff] }
 0x116   :  { %v1907_v52 = vadd.f32 -1.0, %v2536_v47 }
 0x117   :  { %v581_v53 = vmin.f32 %v3187_v48, 0.0  ;;  %v479_v54 = vadd.f32 %v447_v36, %v282_v50  ;;  %v402_v49 = vpop.permute.xlu0 %401  ;;  %2541 = vpow2.f32 %v637_v46  ;;  %v1167_v36 = vld [vmem:[%s3523_s5 + $0x60] sm:$0xff]  ;;  %vm549_vm10 = vcmp.gt.f32.partialorder %v3187_v48, 0.0 }
 0x118   :  { %v448_v56 = vmul.f32 %v2964_v61, %v402_v49  ;;  %v234_v58 = vpop.permute.xlu1 %233  ;;  %v705_v51 = vsel %vm545_vm6, %v3154_v3, %v1907_v52  ;;  %v2424_v37 = vpack.c.bf16 %v1168_v45, %v1167_v36 }
 0x119   :  { %v2538_v55 = vpop.eup %2537  ;;  %v3195_v59 = vadd.f32 %v2973_v4, %v479_v54  ;;  %v283_v62 = vmul.f32 %v2962_v60, %v234_v58  ;;  %2193 = vmatprep.mubr.f32.mxu1 %v705_v51  ;;  %v639_v63 = vmul.f32 1.442695, %v581_v53  ;;  %v1169_v53 = vld [vmem:[%s3523_s5 + $0x70] sm:$0xff]  ;;  %v1170_v54 = vld [vmem:[%s3523_s5 + $0x78] sm:$0xff] }
 0x11a   :  { %v1908_v5 = vadd.f32 -1.0, %v2538_v55 }
 0x11b   :  { %v582_v3 = vmin.f32 %v3195_v59, 0.0  ;;  %v480_v6 = vadd.f32 %v448_v56, %v283_v62  ;;  %v406_v9 = vpop.permute.xlu0 %405  ;;  %2543 = vpow2.f32 %v639_v63  ;;  %v2428_v56 = vpack.c.bf16 %v1170_v54, %v1169_v53 }
 0x11c   :  { %v449_v10 = vmul.f32 %v2964_v61, %v406_v9  ;;  %v239_v8 = vpop.permute.xlu1 %238  ;;  %v706_v11 = vsel %vm546_vm7, %v3163_v16, %v1908_v5  ;;  %v2416_v16 = vpack.c.bf16 %v1164_v12, %v1163_v41  ;;  %vm550_vm11 = vcmp.gt.f32.partialorder %v3195_v59, 0.0 }
 0x11d   :  { %v2540_v2 = vpop.eup %2539  ;;  %v3209_v7 = vadd.f32 %v2973_v4, %v480_v6  ;;  %v284_v13 = vmul.f32 %v2962_v60, %v239_v8  ;;  %2194 = vmatmul.mubr.f32.gmra.mrb[6].mxu1 %v706_v11  ;;  %v641_v15 = vmul.f32 1.442695, %v582_v3 }
 0x11e   :  { %v1909_v17 = vadd.f32 -1.0, %v2540_v2  ;;  %2417 = vmatprep.subr.bf16.mxu1 %v2416_v16 }
 0x11f   :  { %v583_v19 = vmin.f32 %v3209_v7, 0.0  ;;  %v481_v20 = vadd.f32 %v449_v10, %v284_v13  ;;  %v410_v21 = vpop.permute.xlu0 %409  ;;  %2545 = vpow2.f32 %v641_v15  ;;  %2419 = vmatpush3.bf16.msra.mxu1 %v2416_v16  ;;  %vm551_vm12 = vcmp.gt.f32.partialorder %v3209_v7, 0.0  ;;  %v3257_v10 = vld [vmem:[%s3522_s4] ss:$0 sm:$0xff] }
 0x120   :  { %v450_v14 = vmul.f32 %v2964_v61, %v410_v21  ;;  %v244_v22 = vpop.permute.xlu1 %243  ;;  %v707_v18 = vsel %vm547_vm8, %v3171_v26, %v1909_v17  ;;  %2421 = vmatprep.subr.bf16.mxu1 %v2420_v33 }
 0x121   :  { %v2542_v24 = vpop.eup %2541  ;;  %v520_v27 = vadd.f32 %v2973_v4, %v481_v20  ;;  %v285_v23 = vmul.f32 %v2962_v60, %v244_v22  ;;  %2196 = vmatprep.mubr.f32.mxu1 %v707_v18  ;;  %v643_v29 = vmul.f32 1.442695, %v583_v19 }
 0x122   :  { %v1910_v28 = vadd.f32 -1.0, %v2542_v24  ;;  %v1595_v24 = vld [vmem:[#allocation4] sm:$0xff] }
 0x123   :  { %v584_v26 = vmin.f32 %v520_v27, 0.0  ;;  %v482_v25 = vadd.f32 %v450_v14, %v285_v23  ;;  %v414_v30 = vpop.permute.xlu0 %413  ;;  %2547 = vpow2.f32 %v643_v29  ;;  %2423 = vmatpush3.bf16.msra.mxu1 %v2420_v33  ;;  %vm552_vm13 = vcmp.gt.f32.partialorder %v520_v27, 0.0  ;;  %v1597_v23 = vld [vmem:[#allocation4 + $0x10] sm:$0xff] }
 0x124   :  { %v451_v35 = vmul.f32 %v2964_v61, %v414_v30  ;;  %v249_v39 = vpop.permute.xlu1 %248  ;;  %v708_v34 = vsel %vm548_vm9, %v3179_v38, %v1910_v28  ;;  %2425 = vmatprep.subr.bf16.mxu1 %v2424_v37  ;;  %v1599_v30 = vld [vmem:[#allocation4 + $0x20] sm:$0xff] }
 0x125   :  { %v2544_v40 = vpop.eup %2543  ;;  %v521_v43 = vadd.f32 %v2973_v4, %v482_v25  ;;  %v286_v44 = vmul.f32 %v2962_v60, %v249_v39  ;;  %2197 = vmatmul.mubr.f32.gmra.mrb[8].mxu1 %v708_v34  ;;  %v645_v42 = vmul.f32 1.442695, %v584_v26  ;;  %v2436_v25 = vpack.c.bf16 %v1598_v32, %v1597_v23 }
 0x126   :  { %v1911_v61 = vadd.f32 -1.0, %v2544_v40 }
 0x127   :  { %v585_v38 = vmin.f32 %v521_v43, 0.0  ;;  %v483_v47 = vadd.f32 %v451_v35, %v286_v44  ;;  %2549 = vpow2.f32 %v645_v42  ;;  %2427 = vmatpush3.bf16.msra.mxu1 %v2424_v37  ;;  %vm553_vm14 = vcmp.gt.f32.partialorder %v521_v43, 0.0  ;;  %v1600_v35 = vld [vmem:[#allocation4 + $0x28] sm:$0xff] }
 0x128   :  { %v709_v60 = vsel %vm549_vm10, %v3187_v48, %v1911_v61  ;;  %2429 = vmatprep.subr.bf16.mxu1 %v2428_v56  ;;  %v2440_v36 = vpack.c.bf16 %v1600_v35, %v1599_v30 }
 0x129   :  { %v2546_v50 = vpop.eup %2545  ;;  %v522_v46 = vadd.f32 %v2973_v4, %v483_v47  ;;  %2199 = vmatprep.mubr.f32.mxu1 %v709_v60  ;;  %v647_v52 = vmul.f32 1.442695, %v585_v38 }
 0x12a   :  { %v1912_v49 = vadd.f32 -1.0, %v2546_v50 }
 0x12b   :  { %v586_v58 = vmin.f32 %v522_v46, 0.0  ;;  %2551 = vpow2.f32 %v647_v52  ;;  %2431 = vmatpush3.bf16.msra.mxu1 %v2428_v56  ;;  %vm554_vm15 = vcmp.gt.f32.partialorder %v522_v46, 0.0 }
 0x12c   :  { %v710_v48 = vsel %vm550_vm11, %v3195_v59, %v1912_v49 }
 0x12d   :  { %v2548_v4 = vpop.eup %2547  ;;  %2200 = vmatmul.mubr.f32.gmra.mrb[10].mxu1 %v710_v48  ;;  %v649_v51 = vmul.f32 1.442695, %v586_v58 }
 0x12e   :  { %v1913_v55 = vadd.f32 -1.0, %v2548_v4 }
 0x12f   :  { %2553 = vpow2.f32 %v649_v51 }
 0x130   :  { %v711_v62 = vsel %vm551_vm12, %v3209_v7, %v1913_v55 }
 0x131   :  { %v2550_v63 = vpop.eup %2549  ;;  %2202 = vmatprep.mubr.f32.mxu1 %v711_v62 }
 0x132   :  { %v1914_v57 = vadd.f32 -1.0, %v2550_v63 }
 0x134   :  { %v712_v1 = vsel %vm552_vm13, %v520_v27, %v1914_v57  ;;  %v1596_v27 = vld [vmem:[#allocation4 + $0x8] sm:$0xff] }
 0x135   :  { %v2552_v5 = vpop.eup %2551  ;;  %2203 = vmatmul.mubr.f32.gmra.mrb[12].mxu1 %v712_v1  ;;  %v2432_v31 = vpack.c.bf16 %v1596_v27, %v1595_v24 }
 0x136   :  { %v1915_v0 = vadd.f32 -1.0, %v2552_v5 }
 0x137   :  { %2433 = vmatprep.subr.bf16.mxu0 %v2432_v31 }
 0x138   :  { %v713_v59 = vsel %vm553_vm14, %v521_v43, %v1915_v0  ;;  %2435 = vmatpush3.bf16.msra.mxu0 %v2432_v31 }
 0x139   :  { %v2554_v3 = vpop.eup %2553  ;;  %2205 = vmatprep.mubr.f32.mxu1 %v713_v59  ;;  %2437 = vmatprep.subr.bf16.mxu0 %v2436_v25 }
 0x13a   :  { %v1916_v6 = vadd.f32 -1.0, %v2554_v3 }
 0x13c   :  { %v714_v9 = vsel %vm554_vm15, %v522_v46, %v1916_v6  ;;  %2439 = vmatpush3.bf16.msra.mxu0 %v2436_v25 }
 0x13d   :  { %2206 = vmatmul.mubr.f32.gmra.mrb[14].mxu1 %v714_v9  ;;  %2441 = vmatprep.subr.bf16.mxu0 %v2440_v36 }
 0x140   :  { %2443 = vmatpush3.bf16.msra.mxu0 %v2440_v36 }
 0x198   :  { %v2162_v8 = vpop.f32.mrb[0].mxu0 }
 0x199   :  { %v810_v11 = vadd.f32 %v2162_v8, %v3257_v10  ;;  %v804_v2 = vpop.f32.mrb[1].mxu0 }
 0x19a   :  { %v805_v7 = vadd.f32 %v3257_v10, %v804_v2 }
 0x19b   :  { %v996_v13 = vmin.f32 %v810_v11, 0.0  ;;  %vm964_vm1 = vcmp.gt.f32.partialorder %v810_v11, 0.0 }
 0x19c   :  { %v995_v15 = vmin.f32 %v805_v7, 0.0  ;;  %vm963_vm0 = vcmp.gt.f32.partialorder %v805_v7, 0.0 }
 0x19d   :  { %v1029_v41 = vmul.f32 1.442695, %v996_v13 }
 0x19e   :  { %v1027_v12 = vmul.f32 1.442695, %v995_v15 }
 0x19f   :  { %2555 = vpow2.f32 %v1029_v41 }
 0x1a0   :  { %2557 = vpow2.f32 %v1027_v12  ;;  %v2165_v17 = vpop.f32.mrb[2].mxu0 }
 0x1a1   :  { %v820_v16 = vadd.f32 %v2165_v17, %v3257_v10  ;;  %v814_v19 = vpop.f32.mrb[3].mxu0 }
 0x1a2   :  { %v815_v20 = vadd.f32 %v3257_v10, %v814_v19 }
 0x1a3   :  { %v998_v21 = vmin.f32 %v820_v16, 0.0  ;;  %vm966_vm3 = vcmp.gt.f32.partialorder %v820_v16, 0.0 }
 0x1a4   :  { %v997_v14 = vmin.f32 %v815_v20, 0.0  ;;  %vm965_vm2 = vcmp.gt.f32.partialorder %v815_v20, 0.0 }
 0x1a5   :  { %v1033_v22 = vmul.f32 1.442695, %v998_v21 }
 0x1a6   :  { %v1031_v18 = vmul.f32 1.442695, %v997_v14 }
 0x1a7   :  { %2559 = vpow2.f32 %v1033_v22 }
 0x1a8   :  { %2561 = vpow2.f32 %v1031_v18  ;;  %v2168_v29 = vpop.f32.mrb[4].mxu0 }
 0x1a9   :  { %v2556_v28 = vpop.eup %2555  ;;  %v3264_v33 = vadd.f32 %v2168_v29, %v3257_v10  ;;  %v824_v26 = vpop.f32.mrb[5].mxu0 }
 0x1aa   :  { %v2558_v39 = vpop.eup %2557  ;;  %v1919_v34 = vadd.f32 -1.0, %v2556_v28  ;;  %v825_v40 = vadd.f32 %v3257_v10, %v824_v26 }
 0x1ab   :  { %v1000_v43 = vmin.f32 %v3264_v33, 0.0  ;;  %v1918_v44 = vadd.f32 -1.0, %v2558_v39  ;;  %vm968_vm5 = vcmp.gt.f32.partialorder %v3264_v33, 0.0 }
 0x1ac   :  { %v999_v42 = vmin.f32 %v825_v40, 0.0  ;;  %v1124_v37 = vsel %vm964_vm1, %v810_v11, %v1919_v34  ;;  %vm967_vm4 = vcmp.gt.f32.partialorder %v825_v40, 0.0 }
 0x1ad   :  { %v1037_v45 = vmul.f32 1.442695, %v1000_v43  ;;  %v1123_v61 = vsel %vm963_vm0, %v805_v7, %v1918_v44 }
 0x1ae   :  { %v1035_v38 = vmul.f32 1.442695, %v999_v42  ;;  %2240 = vmatprep.mubr.f32.mxu1 %v1123_v61 }
 0x1af   :  { %2563 = vpow2.f32 %v1037_v45  ;;  %2241 = vmatmul.mubr.f32.vlgmr.msra.gmra.mrb[16].mxu1 %v1124_v37 }
 0x1b0   :  { %2565 = vpow2.f32 %v1035_v38  ;;  %v2171_v47 = vpop.f32.mrb[6].mxu0 }
 0x1b1   :  { %v2560_v60 = vpop.eup %2559  ;;  %v840_v50 = vadd.f32 %v2171_v47, %v3257_v10  ;;  %v834_v46 = vpop.f32.mrb[7].mxu0 }
 0x1b2   :  { %v2562_v52 = vpop.eup %2561  ;;  %v835_v53 = vadd.f32 %v3257_v10, %v834_v46  ;;  %v1921_v54 = vadd.f32 -1.0, %v2560_v60 }
 0x1b3   :  { %v1002_v49 = vmin.f32 %v840_v50, 0.0  ;;  %v1920_v56 = vadd.f32 -1.0, %v2562_v52  ;;  %vm970_vm7 = vcmp.gt.f32.partialorder %v840_v50, 0.0 }
 0x1b4   :  { %v1001_v58 = vmin.f32 %v835_v53, 0.0  ;;  %v1126_v55 = vsel %vm966_vm3, %v820_v16, %v1921_v54  ;;  %vm969_vm6 = vcmp.gt.f32.partialorder %v835_v53, 0.0 }
 0x1b5   :  { %v1041_v48 = vmul.f32 1.442695, %v1002_v49  ;;  %v1125_v4 = vsel %vm965_vm2, %v815_v20, %v1920_v56 }
 0x1b6   :  { %v1039_v51 = vmul.f32 1.442695, %v1001_v58  ;;  %2243 = vmatprep.mubr.f32.mxu1 %v1125_v4 }
 0x1b7   :  { %2567 = vpow2.f32 %v1041_v48  ;;  %2244 = vmatmul.mubr.f32.gmra.mrb[18].mxu1 %v1126_v55 }
 0x1b8   :  { %2569 = vpow2.f32 %v1039_v51  ;;  %v2174_v62 = vpop.f32.mrb[8].mxu0 }
 0x1b9   :  { %v2564_v63 = vpop.eup %2563  ;;  %v850_v57 = vadd.f32 %v2174_v62, %v3257_v10  ;;  %v844_v1 = vpop.f32.mrb[9].mxu0 }
 0x1ba   :  { %v2566_v5 = vpop.eup %2565  ;;  %v845_v0 = vadd.f32 %v3257_v10, %v844_v1  ;;  %v1923_v59 = vadd.f32 -1.0, %v2564_v63 }
 0x1bb   :  { %v1004_v3 = vmin.f32 %v850_v57, 0.0  ;;  %v1922_v6 = vadd.f32 -1.0, %v2566_v5  ;;  %vm972_vm9 = vcmp.gt.f32.partialorder %v850_v57, 0.0 }
 0x1bc   :  { %v1003_v9 = vmin.f32 %v845_v0, 0.0  ;;  %v1128_v7 = vsel %vm968_vm5, %v3264_v33, %v1923_v59  ;;  %vm971_vm8 = vcmp.gt.f32.partialorder %v845_v0, 0.0 }
 0x1bd   :  { %v1045_v8 = vmul.f32 1.442695, %v1004_v3  ;;  %v1127_v11 = vsel %vm967_vm4, %v825_v40, %v1922_v6 }
 0x1be   :  { %v1043_v2 = vmul.f32 1.442695, %v1003_v9  ;;  %2246 = vmatprep.mubr.f32.mxu1 %v1127_v11 }
 0x1bf   :  { %2571 = vpow2.f32 %v1045_v8  ;;  %2247 = vmatmul.mubr.f32.gmra.mrb[20].mxu1 %v1128_v7 }
 0x1c0   :  { %2573 = vpow2.f32 %v1043_v2  ;;  %v2177_v13 = vpop.f32.mrb[10].mxu0 }
 0x1c1   :  { %v2568_v15 = vpop.eup %2567  ;;  %v860_v41 = vadd.f32 %v2177_v13, %v3257_v10  ;;  %v854_v12 = vpop.f32.mrb[11].mxu0 }
 0x1c2   :  { %v2570_v17 = vpop.eup %2569  ;;  %v855_v16 = vadd.f32 %v3257_v10, %v854_v12  ;;  %v1925_v19 = vadd.f32 -1.0, %v2568_v15 }
 0x1c3   :  { %v1006_v20 = vmin.f32 %v860_v41, 0.0  ;;  %v1924_v21 = vadd.f32 -1.0, %v2570_v17  ;;  %vm974_vm11 = vcmp.gt.f32.partialorder %v860_v41, 0.0 }
 0x1c4   :  { %v1005_v14 = vmin.f32 %v855_v16, 0.0  ;;  %v1130_v27 = vsel %vm970_vm7, %v840_v50, %v1925_v19  ;;  %vm973_vm10 = vcmp.gt.f32.partialorder %v855_v16, 0.0 }
 0x1c5   :  { %v1049_v22 = vmul.f32 1.442695, %v1006_v20  ;;  %v1129_v18 = vsel %vm969_vm6, %v835_v53, %v1924_v21 }
 0x1c6   :  { %v1047_v24 = vmul.f32 1.442695, %v1005_v14  ;;  %2249 = vmatprep.mubr.f32.mxu1 %v1129_v18 }
 0x1c7   :  { %2575 = vpow2.f32 %v1049_v22  ;;  %2250 = vmatmul.mubr.f32.gmra.mrb[22].mxu1 %v1130_v27 }
 0x1c8   :  { %2577 = vpow2.f32 %v1047_v24  ;;  %v2180_v23 = vpop.f32.mrb[12].mxu0 }
 0x1c9   :  { %v2572_v29 = vpop.eup %2571  ;;  %v870_v31 = vadd.f32 %v2180_v23, %v3257_v10  ;;  %v864_v32 = vpop.f32.mrb[13].mxu0 }
 0x1ca   :  { %v2574_v28 = vpop.eup %2573  ;;  %v865_v33 = vadd.f32 %v3257_v10, %v864_v32  ;;  %v1927_v26 = vadd.f32 -1.0, %v2572_v29 }
 0x1cb   :  { %v1008_v25 = vmin.f32 %v870_v31, 0.0  ;;  %v1926_v30 = vadd.f32 -1.0, %v2574_v28  ;;  %vm976_vm13 = vcmp.gt.f32.partialorder %v870_v31, 0.0 }
 0x1cc   :  { %v1007_v35 = vmin.f32 %v865_v33, 0.0  ;;  %v1132_v43 = vsel %vm972_vm9, %v850_v57, %v1927_v26  ;;  %vm975_vm12 = vcmp.gt.f32.partialorder %v865_v33, 0.0 }
 0x1cd   :  { %v1053_v39 = vmul.f32 1.442695, %v1008_v25  ;;  %v1131_v34 = vsel %vm971_vm8, %v845_v0, %v1926_v30 }
 0x1ce   :  { %v1051_v40 = vmul.f32 1.442695, %v1007_v35  ;;  %2252 = vmatprep.mubr.f32.mxu1 %v1131_v34 }
 0x1cf   :  { %2579 = vpow2.f32 %v1053_v39  ;;  %2253 = vmatmul.mubr.f32.gmra.mrb[24].mxu1 %v1132_v43 }
 0x1d0   :  { %2581 = vpow2.f32 %v1051_v40  ;;  %v2183_v44 = vpop.f32.mrb[14].mxu0 }
 0x1d1   :  { %v2576_v42 = vpop.eup %2575  ;;  %v880_v36 = vadd.f32 %v2183_v44, %v3257_v10  ;;  %v874_v45 = vpop.f32.mrb[15].mxu0 }
 0x1d2   :  { %v2578_v61 = vpop.eup %2577  ;;  %v875_v37 = vadd.f32 %v3257_v10, %v874_v45  ;;  %v1929_v38 = vadd.f32 -1.0, %v2576_v42 }
 0x1d3   :  { %v1010_v47 = vmin.f32 %v880_v36, 0.0  ;;  %v1928_v60 = vadd.f32 -1.0, %v2578_v61  ;;  %vm978_vm15 = vcmp.gt.f32.partialorder %v880_v36, 0.0 }
 0x1d4   :  { %v1009_v50 = vmin.f32 %v875_v37, 0.0  ;;  %v1134_v54 = vsel %vm974_vm11, %v860_v41, %v1929_v38  ;;  %vm977_vm14 = vcmp.gt.f32.partialorder %v875_v37, 0.0 }
 0x1d5   :  { %v1057_v46 = vmul.f32 1.442695, %v1010_v47  ;;  %v1133_v52 = vsel %vm973_vm10, %v855_v16, %v1928_v60 }
 0x1d6   :  { %v1055_v53 = vmul.f32 1.442695, %v1009_v50  ;;  %2255 = vmatprep.mubr.f32.mxu1 %v1133_v52 }
 0x1d7   :  { %2583 = vpow2.f32 %v1057_v46  ;;  %2256 = vmatmul.mubr.f32.gmra.mrb[26].mxu1 %v1134_v54 }
 0x1d8   :  { %2585 = vpow2.f32 %v1055_v53  ;;  %v2186_v49 = vpop.f32.mrb[0].mxu1 }
 0x1d9   :  { %v2580_v56 = vpop.eup %2579  ;;  %v890_v58 = vadd.f32 %v2186_v49, %v3257_v10  ;;  %v884_v48 = vpop.f32.mrb[1].mxu1 }
 0x1da   :  { %v2582_v4 = vpop.eup %2581  ;;  %v885_v51 = vadd.f32 %v3257_v10, %v884_v48  ;;  %v1931_v55 = vadd.f32 -1.0, %v2580_v56 }
 0x1db   :  { %v1012_v62 = vmin.f32 %v890_v58, 0.0  ;;  %v1930_v63 = vadd.f32 -1.0, %v2582_v4  ;;  %vm980_vm1 = vcmp.gt.f32.partialorder %v890_v58, 0.0 }
 0x1dc   :  { %v1011_v57 = vmin.f32 %v885_v51, 0.0  ;;  %v1136_v59 = vsel %vm976_vm13, %v870_v31, %v1931_v55  ;;  %vm979_vm0 = vcmp.gt.f32.partialorder %v885_v51, 0.0 }
 0x1dd   :  { %v1061_v1 = vmul.f32 1.442695, %v1012_v62  ;;  %v1135_v5 = vsel %vm975_vm12, %v865_v33, %v1930_v63 }
 0x1de   :  { %v1059_v0 = vmul.f32 1.442695, %v1011_v57  ;;  %2258 = vmatprep.mubr.f32.mxu1 %v1135_v5 }
 0x1df   :  { %2587 = vpow2.f32 %v1061_v1  ;;  %2259 = vmatmul.mubr.f32.gmra.mrb[28].mxu1 %v1136_v59 }
 0x1e0   :  { %2589 = vpow2.f32 %v1059_v0  ;;  %v2189_v3 = vpop.f32.mrb[2].mxu1 }
 0x1e1   :  { %v2584_v6 = vpop.eup %2583  ;;  %v900_v9 = vadd.f32 %v2189_v3, %v3257_v10  ;;  %v894_v8 = vpop.f32.mrb[3].mxu1 }
 0x1e2   :  { %v2586_v11 = vpop.eup %2585  ;;  %v895_v2 = vadd.f32 %v3257_v10, %v894_v8  ;;  %v1933_v7 = vadd.f32 -1.0, %v2584_v6  ;;  %v1602_v8 = vld [vmem:[#allocation4 + $0x38] sm:$0xff] }
 0x1e3   :  { %v1014_v13 = vmin.f32 %v900_v9, 0.0  ;;  %v1932_v15 = vadd.f32 -1.0, %v2586_v11  ;;  %vm982_vm3 = vcmp.gt.f32.partialorder %v900_v9, 0.0 }
 0x1e4   :  { %v1013_v41 = vmin.f32 %v895_v2, 0.0  ;;  %v1138_v19 = vsel %vm978_vm15, %v880_v36, %v1933_v7  ;;  %vm981_vm2 = vcmp.gt.f32.partialorder %v895_v2, 0.0 }
 0x1e5   :  { %v1065_v12 = vmul.f32 1.442695, %v1014_v13  ;;  %v1137_v17 = vsel %vm977_vm14, %v875_v37, %v1932_v15 }
 0x1e6   :  { %v1063_v16 = vmul.f32 1.442695, %v1013_v41  ;;  %2261 = vmatprep.mubr.f32.mxu1 %v1137_v17  ;;  %v1604_v17 = vld [vmem:[#allocation4 + $0x48] sm:$0xff] }
 0x1e7   :  { %2591 = vpow2.f32 %v1065_v12  ;;  %2262 = vmatmul.mubr.f32.gmra.mrb[30].mxu1 %v1138_v19  ;;  %v1603_v12 = vld [vmem:[#allocation4 + $0x40] sm:$0xff] }
 0x1e8   :  { %2593 = vpow2.f32 %v1063_v16  ;;  %v2192_v20 = vpop.f32.mrb[4].mxu1  ;;  %v2448_v19 = vpack.c.bf16 %v1604_v17, %v1603_v12 }
 0x1e9   :  { %v2588_v21 = vpop.eup %2587  ;;  %v910_v14 = vadd.f32 %v2192_v20, %v3257_v10  ;;  %v904_v22 = vpop.f32.mrb[5].mxu1 }
 0x1ea   :  { %v2590_v18 = vpop.eup %2589  ;;  %v905_v24 = vadd.f32 %v3257_v10, %v904_v22  ;;  %v1935_v27 = vadd.f32 -1.0, %v2588_v21 }
 0x1eb   :  { %v1016_v23 = vmin.f32 %v910_v14, 0.0  ;;  %v1934_v29 = vadd.f32 -1.0, %v2590_v18  ;;  %vm984_vm5 = vcmp.gt.f32.partialorder %v910_v14, 0.0 }
 0x1ec   :  { %v1015_v31 = vmin.f32 %v905_v24, 0.0  ;;  %v1140_v26 = vsel %vm980_vm1, %v890_v58, %v1935_v27  ;;  %vm983_vm4 = vcmp.gt.f32.partialorder %v905_v24, 0.0 }
 0x1ed   :  { %v1069_v32 = vmul.f32 1.442695, %v1016_v23  ;;  %v1139_v28 = vsel %vm979_vm0, %v885_v51, %v1934_v29  ;;  %v1605_v29 = vld [vmem:[#allocation4 + $0x50] sm:$0xff] }
 0x1ee   :  { %v1067_v33 = vmul.f32 1.442695, %v1015_v31  ;;  %2264 = vmatprep.mubr.f32.mxu1 %v1139_v28  ;;  %v1606_v31 = vld [vmem:[#allocation4 + $0x58] sm:$0xff] }
 0x1ef   :  { %2595 = vpow2.f32 %v1069_v32  ;;  %2265 = vmatmul.mubr.f32.gmra.mrb[32].mxu1 %v1140_v26  ;;  %v2452_v28 = vpack.c.bf16 %v1606_v31, %v1605_v29 }
 0x1f0   :  { %2597 = vpow2.f32 %v1067_v33  ;;  %v2195_v25 = vpop.f32.mrb[6].mxu1 }
 0x1f1   :  { %v2592_v30 = vpop.eup %2591  ;;  %v920_v35 = vadd.f32 %v2195_v25, %v3257_v10  ;;  %v914_v39 = vpop.f32.mrb[7].mxu1 }
 0x1f2   :  { %v2594_v34 = vpop.eup %2593  ;;  %v915_v40 = vadd.f32 %v3257_v10, %v914_v39  ;;  %v1937_v43 = vadd.f32 -1.0, %v2592_v30  ;;  %v1608_v39 = vld [vmem:[#allocation4 + $0x68] sm:$0xff] }
 0x1f3   :  { %v1018_v44 = vmin.f32 %v920_v35, 0.0  ;;  %v1936_v42 = vadd.f32 -1.0, %v2594_v34  ;;  %vm986_vm7 = vcmp.gt.f32.partialorder %v920_v35, 0.0 }
 0x1f4   :  { %v1017_v36 = vmin.f32 %v915_v40, 0.0  ;;  %v1142_v38 = vsel %vm982_vm3, %v900_v9, %v1937_v43  ;;  %v1601_v9 = vld [vmem:[#allocation4 + $0x30] sm:$0xff]  ;;  %vm985_vm6 = vcmp.gt.f32.partialorder %v915_v40, 0.0 }
 0x1f5   :  { %v1073_v45 = vmul.f32 1.442695, %v1018_v44  ;;  %v1141_v61 = vsel %vm981_vm2, %v895_v2, %v1936_v42  ;;  %v2444_v2 = vpack.c.bf16 %v1602_v8, %v1601_v9 }
 0x1f6   :  { %v1071_v37 = vmul.f32 1.442695, %v1017_v36  ;;  %2267 = vmatprep.mubr.f32.mxu1 %v1141_v61 }
 0x1f7   :  { %2599 = vpow2.f32 %v1073_v45  ;;  %2268 = vmatmul.mubr.f32.gmra.mrb[34].mxu1 %v1142_v38  ;;  %2445 = vmatprep.subr.bf16.mxu0 %v2444_v2 }
 0x1f8   :  { %2601 = vpow2.f32 %v1071_v37  ;;  %v2198_v47 = vpop.f32.mrb[8].mxu1  ;;  %2447 = vmatpush3.bf16.msra.mxu0 %v2444_v2 }
 0x1f9   :  { %v2596_v60 = vpop.eup %2595  ;;  %v3289_v50 = vadd.f32 %v2198_v47, %v3257_v10  ;;  %v924_v46 = vpop.f32.mrb[9].mxu1  ;;  %2449 = vmatprep.subr.bf16.mxu0 %v2448_v19  ;;  %v1609_v47 = vld [vmem:[#allocation4 + $0x70] sm:$0xff] }
 0x1fa   :  { %v2598_v52 = vpop.eup %2597  ;;  %v925_v53 = vadd.f32 %v3257_v10, %v924_v46  ;;  %v1939_v54 = vadd.f32 -1.0, %v2596_v60  ;;  %v1610_v60 = vld [vmem:[#allocation4 + $0x78] sm:$0xff] }
 0x1fb   :  { %v1020_v49 = vmin.f32 %v3289_v50, 0.0  ;;  %v1938_v56 = vadd.f32 -1.0, %v2598_v52  ;;  %vm988_vm9 = vcmp.gt.f32.partialorder %v3289_v50, 0.0  ;;  %v2460_v46 = vpack.c.bf16 %v1610_v60, %v1609_v47 }
 0x1fc   :  { %v1019_v58 = vmin.f32 %v925_v53, 0.0  ;;  %v1144_v55 = vsel %vm984_vm5, %v910_v14, %v1939_v54  ;;  %2451 = vmatpush3.bf16.msra.mxu0 %v2448_v19  ;;  %vm987_vm8 = vcmp.gt.f32.partialorder %v925_v53, 0.0 }
 0x1fd   :  { %v1077_v48 = vmul.f32 1.442695, %v1020_v49  ;;  %v1143_v4 = vsel %vm983_vm4, %v905_v24, %v1938_v56  ;;  %2453 = vmatprep.subr.bf16.mxu0 %v2452_v28 }
 0x1fe   :  { %v1075_v51 = vmul.f32 1.442695, %v1019_v58  ;;  %2270 = vmatprep.mubr.f32.mxu1 %v1143_v4 }
 0x1ff   :  { %2603 = vpow2.f32 %v1077_v48  ;;  %2271 = vmatmul.mubr.f32.gmra.mrb[36].mxu1 %v1144_v55 }
 0x200   :  { %2605 = vpow2.f32 %v1075_v51  ;;  %v2201_v62 = vpop.f32.mrb[10].mxu1  ;;  %2455 = vmatpush3.bf16.msra.mxu0 %v2452_v28 }
 0x201   :  { %v2600_v63 = vpop.eup %2599  ;;  %v3294_v57 = vadd.f32 %v2201_v62, %v3257_v10  ;;  %v934_v1 = vpop.f32.mrb[11].mxu1 }
 0x202   :  { %v2602_v5 = vpop.eup %2601  ;;  %v3297_v0 = vadd.f32 %v3257_v10, %v934_v1  ;;  %v1941_v59 = vadd.f32 -1.0, %v2600_v63 }
 0x203   :  { %v1022_v3 = vmin.f32 %v3294_v57, 0.0  ;;  %v1940_v6 = vadd.f32 -1.0, %v2602_v5  ;;  %vm990_vm11 = vcmp.gt.f32.partialorder %v3294_v57, 0.0 }
 0x204   :  { %v1021_v11 = vmin.f32 %v3297_v0, 0.0  ;;  %v1146_v41 = vsel %vm986_vm7, %v920_v35, %v1941_v59  ;;  %v1607_v35 = vld [vmem:[#allocation4 + $0x60] sm:$0xff]  ;;  %vm989_vm10 = vcmp.gt.f32.partialorder %v3297_v0, 0.0 }
 0x205   :  { %v1081_v7 = vmul.f32 1.442695, %v1022_v3  ;;  %v1145_v13 = vsel %vm985_vm6, %v915_v40, %v1940_v6  ;;  %v2456_v40 = vpack.c.bf16 %v1608_v39, %v1607_v35 }
 0x206   :  { %v1079_v15 = vmul.f32 1.442695, %v1021_v11  ;;  %2273 = vmatprep.mubr.f32.mxu1 %v1145_v13 }
 0x207   :  { %2607 = vpow2.f32 %v1081_v7  ;;  %2274 = vmatmul.mubr.f32.gmra.mrb[38].mxu1 %v1146_v41  ;;  %2457 = vmatprep.subr.bf16.mxu0 %v2456_v40 }
 0x208   :  { %2609 = vpow2.f32 %v1079_v15  ;;  %v2204_v16 = vpop.f32.mrb[12].mxu1  ;;  %2459 = vmatpush3.bf16.msra.mxu0 %v2456_v40 }
 0x209   :  { %v2604_v20 = vpop.eup %2603  ;;  %v3302_v21 = vadd.f32 %v2204_v16, %v3257_v10  ;;  %v944_v14 = vpop.f32.mrb[13].mxu1  ;;  %2461 = vmatprep.subr.bf16.mxu0 %v2460_v46 }
 0x20a   :  { %v2606_v22 = vpop.eup %2605  ;;  %v945_v18 = vadd.f32 %v3257_v10, %v944_v14  ;;  %v1943_v24 = vadd.f32 -1.0, %v2604_v20 }
 0x20b   :  { %v1024_v27 = vmin.f32 %v3302_v21, 0.0  ;;  %v1942_v23 = vadd.f32 -1.0, %v2606_v22  ;;  %vm992_vm13 = vcmp.gt.f32.partialorder %v3302_v21, 0.0 }
 0x20c   :  { %v1023_v32 = vmin.f32 %v945_v18, 0.0  ;;  %v1148_v30 = vsel %vm988_vm9, %v3289_v50, %v1943_v24  ;;  %2463 = vmatpush3.bf16.msra.mxu0 %v2460_v46  ;;  %vm991_vm12 = vcmp.gt.f32.partialorder %v945_v18, 0.0 }
 0x20d   :  { %v1085_v33 = vmul.f32 1.442695, %v1024_v27  ;;  %v1147_v26 = vsel %vm987_vm8, %v925_v53, %v1942_v23 }
 0x20e   :  { %v1083_v25 = vmul.f32 1.442695, %v1023_v32  ;;  %2276 = vmatprep.mubr.f32.mxu1 %v1147_v26 }
 0x20f   :  { %2611 = vpow2.f32 %v1085_v33  ;;  %2277 = vmatmul.mubr.f32.gmra.mrb[40].mxu1 %v1148_v30 }
 0x210   :  { %2613 = vpow2.f32 %v1083_v25  ;;  %v2207_v34 = vpop.f32.mrb[14].mxu1 }
 0x211   :  { %v2608_v43 = vpop.eup %2607  ;;  %v960_v44 = vadd.f32 %v2207_v34, %v3257_v10  ;;  %v954_v42 = vpop.f32.mrb[15].mxu1 }
 0x212   :  { %v2610_v36 = vpop.eup %2609  ;;  %v955_v45 = vadd.f32 %v3257_v10, %v954_v42  ;;  %v1945_v61 = vadd.f32 -1.0, %v2608_v43 }
 0x213   :  { %v1026_v37 = vmin.f32 %v960_v44, 0.0  ;;  %v1944_v38 = vadd.f32 -1.0, %v2610_v36  ;;  %vm994_vm15 = vcmp.gt.f32.partialorder %v960_v44, 0.0 }
 0x214   :  { %v1025_v50 = vmin.f32 %v955_v45, 0.0  ;;  %v1150_v10 = vsel %vm990_vm11, %v3294_v57, %v1945_v61  ;;  %vm993_vm14 = vcmp.gt.f32.partialorder %v955_v45, 0.0 }
 0x215   :  { %v1089_v52 = vmul.f32 1.442695, %v1026_v37  ;;  %v1149_v53 = vsel %vm989_vm10, %v3297_v0, %v1944_v38  ;;  %v3319_v0 = vld [vmem:[%s3524_s6] ss:$0 sm:$0xff] }
 0x216   :  { %v1087_v54 = vmul.f32 1.442695, %v1025_v50  ;;  %2279 = vmatprep.mubr.f32.mxu1 %v1149_v53 }
 0x217   :  { %2615 = vpow2.f32 %v1089_v52  ;;  %2280 = vmatmul.mubr.f32.gmra.mrb[42].mxu1 %v1150_v10 }
 0x218   :  { %2617 = vpow2.f32 %v1087_v54 }
 0x219   :  { %v2612_v49 = vpop.eup %2611 }
 0x21a   :  { %v2614_v56 = vpop.eup %2613  ;;  %v1947_v58 = vadd.f32 -1.0, %v2612_v49 }
 0x21b   :  { %v1946_v48 = vadd.f32 -1.0, %v2614_v56 }
 0x21c   :  { %v1152_v51 = vsel %vm992_vm13, %v3302_v21, %v1947_v58 }
 0x21d   :  { %v1151_v4 = vsel %vm991_vm12, %v945_v18, %v1946_v48 }
 0x21e   :  { %2282 = vmatprep.mubr.f32.mxu1 %v1151_v4 }
 0x21f   :  { %2283 = vmatmul.mubr.f32.gmra.mrb[44].mxu1 %v1152_v51 }
 0x221   :  { %v2616_v55 = vpop.eup %2615 }
 0x222   :  { %v2618_v62 = vpop.eup %2617  ;;  %v1949_v63 = vadd.f32 -1.0, %v2616_v55 }
 0x223   :  { %v1948_v57 = vadd.f32 -1.0, %v2618_v62 }
 0x224   :  { %v1154_v5 = vsel %vm994_vm15, %v960_v44, %v1949_v63 }
 0x225   :  { %v1153_v1 = vsel %vm993_vm14, %v955_v45, %v1948_v57 }
 0x226   :  { %2285 = vmatprep.mubr.f32.mxu1 %v1153_v1 }
 0x227   :  { %2286 = vmatmul.mubr.f32.gmra.mrb[46].mxu1 %v1154_v5 }
 0x282   :  { %v2242_v59 = vpop.f32.mrb[16].mxu1 }
 0x283   :  { %v1250_v3 = vadd.f32 %v2242_v59, %v3319_v0  ;;  %v1244_v6 = vpop.f32.mrb[17].mxu1 }
 0x284   :  { %v1245_v9 = vadd.f32 %v3319_v0, %v1244_v6 }
 0x285   :  { %v1436_v8 = vmin.f32 %v1250_v3, 0.0  ;;  %vm1404_vm1 = vcmp.gt.f32.partialorder %v1250_v3, 0.0 }
 0x286   :  { %v1435_v11 = vmin.f32 %v1245_v9, 0.0  ;;  %vm1403_vm0 = vcmp.gt.f32.partialorder %v1245_v9, 0.0 }
 0x287   :  { %v1469_v2 = vmul.f32 1.442695, %v1436_v8 }
 0x288   :  { %v1467_v7 = vmul.f32 1.442695, %v1435_v11 }
 0x289   :  { %2619 = vpow2.f32 %v1469_v2 }
 0x28a   :  { %2621 = vpow2.f32 %v1467_v7  ;;  %v2245_v13 = vpop.f32.mrb[18].mxu1 }
 0x28b   :  { %v1260_v15 = vadd.f32 %v2245_v13, %v3319_v0  ;;  %v1254_v41 = vpop.f32.mrb[19].mxu1 }
 0x28c   :  { %v1255_v12 = vadd.f32 %v3319_v0, %v1254_v41 }
 0x28d   :  { %v1438_v17 = vmin.f32 %v1260_v15, 0.0  ;;  %vm1406_vm3 = vcmp.gt.f32.partialorder %v1260_v15, 0.0 }
 0x28e   :  { %v1437_v16 = vmin.f32 %v1255_v12, 0.0  ;;  %vm1405_vm2 = vcmp.gt.f32.partialorder %v1255_v12, 0.0 }
 0x28f   :  { %v1473_v19 = vmul.f32 1.442695, %v1438_v17 }
 0x290   :  { %v1471_v20 = vmul.f32 1.442695, %v1437_v16 }
 0x291   :  { %2623 = vpow2.f32 %v1473_v19 }
 0x292   :  { %2625 = vpow2.f32 %v1471_v20  ;;  %v2248_v21 = vpop.f32.mrb[20].mxu1 }
 0x293   :  { %v2620_v14 = vpop.eup %2619  ;;  %v1270_v22 = vadd.f32 %v2248_v21, %v3319_v0  ;;  %v1264_v18 = vpop.f32.mrb[21].mxu1 }
 0x294   :  { %v2622_v24 = vpop.eup %2621  ;;  %v1952_v27 = vadd.f32 -1.0, %v2620_v14  ;;  %v1265_v23 = vadd.f32 %v3319_v0, %v1264_v18 }
 0x295   :  { %v1440_v29 = vmin.f32 %v1270_v22, 0.0  ;;  %v1951_v31 = vadd.f32 -1.0, %v2622_v24  ;;  %vm1408_vm5 = vcmp.gt.f32.partialorder %v1270_v22, 0.0 }
 0x296   :  { %v1439_v32 = vmin.f32 %v1265_v23, 0.0  ;;  %v1564_v26 = vsel %vm1404_vm1, %v1250_v3, %v1952_v27  ;;  %vm1407_vm4 = vcmp.gt.f32.partialorder %v1265_v23, 0.0 }
 0x297   :  { %v1477_v28 = vmul.f32 1.442695, %v1440_v29  ;;  %v1563_v33 = vsel %vm1403_vm0, %v1245_v9, %v1951_v31 }
 0x298   :  { %v1475_v25 = vmul.f32 1.442695, %v1439_v32  ;;  %2320 = vmatprep.mubr.f32.mxu0 %v1563_v33 }
 0x299   :  { %2627 = vpow2.f32 %v1477_v28  ;;  %2321 = vmatmul.mubr.f32.vlgmr.msra.gmra.mrb[16].mxu0 %v1564_v26 }
 0x29a   :  { %2629 = vpow2.f32 %v1475_v25  ;;  %v2251_v30 = vpop.f32.mrb[22].mxu1 }
 0x29b   :  { %v2624_v35 = vpop.eup %2623  ;;  %v1280_v39 = vadd.f32 %v2251_v30, %v3319_v0  ;;  %v1274_v34 = vpop.f32.mrb[23].mxu1 }
 0x29c   :  { %v2626_v40 = vpop.eup %2625  ;;  %v1275_v43 = vadd.f32 %v3319_v0, %v1274_v34  ;;  %v1954_v44 = vadd.f32 -1.0, %v2624_v35 }
 0x29d   :  { %v1442_v42 = vmin.f32 %v1280_v39, 0.0  ;;  %v1953_v36 = vadd.f32 -1.0, %v2626_v40  ;;  %vm1410_vm7 = vcmp.gt.f32.partialorder %v1280_v39, 0.0 }
 0x29e   :  { %v1441_v45 = vmin.f32 %v1275_v43, 0.0  ;;  %v1566_v47 = vsel %vm1406_vm3, %v1260_v15, %v1954_v44  ;;  %vm1409_vm6 = vcmp.gt.f32.partialorder %v1275_v43, 0.0 }
 0x29f   :  { %v1481_v61 = vmul.f32 1.442695, %v1442_v42  ;;  %v1565_v37 = vsel %vm1405_vm2, %v1255_v12, %v1953_v36 }
 0x2a0   :  { %v1479_v38 = vmul.f32 1.442695, %v1441_v45  ;;  %2323 = vmatprep.mubr.f32.mxu0 %v1565_v37 }
 0x2a1   :  { %2631 = vpow2.f32 %v1481_v61  ;;  %2324 = vmatmul.mubr.f32.gmra.mrb[18].mxu0 %v1566_v47 }
 0x2a2   :  { %2633 = vpow2.f32 %v1479_v38  ;;  %v2254_v60 = vpop.f32.mrb[24].mxu1 }
 0x2a3   :  { %v2628_v50 = vpop.eup %2627  ;;  %v1290_v46 = vadd.f32 %v2254_v60, %v3319_v0  ;;  %v1284_v52 = vpop.f32.mrb[25].mxu1 }
 0x2a4   :  { %v2630_v53 = vpop.eup %2629  ;;  %v1285_v54 = vadd.f32 %v3319_v0, %v1284_v52  ;;  %v1956_v10 = vadd.f32 -1.0, %v2628_v50 }
 0x2a5   :  { %v1444_v49 = vmin.f32 %v1290_v46, 0.0  ;;  %v1955_v56 = vadd.f32 -1.0, %v2630_v53  ;;  %vm1412_vm9 = vcmp.gt.f32.partialorder %v1290_v46, 0.0 }
 0x2a6   :  { %v1443_v58 = vmin.f32 %v1285_v54, 0.0  ;;  %v1568_v55 = vsel %vm1408_vm5, %v1270_v22, %v1956_v10  ;;  %vm1411_vm8 = vcmp.gt.f32.partialorder %v1285_v54, 0.0 }
 0x2a7   :  { %v1485_v48 = vmul.f32 1.442695, %v1444_v49  ;;  %v1567_v4 = vsel %vm1407_vm4, %v1265_v23, %v1955_v56 }
 0x2a8   :  { %v1483_v51 = vmul.f32 1.442695, %v1443_v58  ;;  %2326 = vmatprep.mubr.f32.mxu0 %v1567_v4 }
 0x2a9   :  { %2635 = vpow2.f32 %v1485_v48  ;;  %2327 = vmatmul.mubr.f32.gmra.mrb[20].mxu0 %v1568_v55 }
 0x2aa   :  { %2637 = vpow2.f32 %v1483_v51  ;;  %v2257_v62 = vpop.f32.mrb[26].mxu1 }
 0x2ab   :  { %v2632_v63 = vpop.eup %2631  ;;  %v1300_v57 = vadd.f32 %v2257_v62, %v3319_v0  ;;  %v1294_v1 = vpop.f32.mrb[27].mxu1 }
 0x2ac   :  { %v2634_v5 = vpop.eup %2633  ;;  %v1295_v59 = vadd.f32 %v3319_v0, %v1294_v1  ;;  %v1958_v3 = vadd.f32 -1.0, %v2632_v63 }
 0x2ad   :  { %v1446_v6 = vmin.f32 %v1300_v57, 0.0  ;;  %v1957_v9 = vadd.f32 -1.0, %v2634_v5  ;;  %vm1414_vm11 = vcmp.gt.f32.partialorder %v1300_v57, 0.0 }
 0x2ae   :  { %v1445_v8 = vmin.f32 %v1295_v59, 0.0  ;;  %v1570_v13 = vsel %vm1410_vm7, %v1280_v39, %v1958_v3  ;;  %vm1413_vm10 = vcmp.gt.f32.partialorder %v1295_v59, 0.0 }
 0x2af   :  { %v1489_v11 = vmul.f32 1.442695, %v1446_v6  ;;  %v1569_v2 = vsel %vm1409_vm6, %v1275_v43, %v1957_v9 }
 0x2b0   :  { %v1487_v7 = vmul.f32 1.442695, %v1445_v8  ;;  %2329 = vmatprep.mubr.f32.mxu0 %v1569_v2 }
 0x2b1   :  { %2639 = vpow2.f32 %v1489_v11  ;;  %2330 = vmatmul.mubr.f32.gmra.mrb[22].mxu0 %v1570_v13 }
 0x2b2   :  { %2641 = vpow2.f32 %v1487_v7  ;;  %v2260_v15 = vpop.f32.mrb[28].mxu1 }
 0x2b3   :  { %v2636_v41 = vpop.eup %2635  ;;  %v1310_v12 = vadd.f32 %v2260_v15, %v3319_v0  ;;  %v1304_v17 = vpop.f32.mrb[29].mxu1 }
 0x2b4   :  { %v2638_v16 = vpop.eup %2637  ;;  %v1305_v19 = vadd.f32 %v3319_v0, %v1304_v17  ;;  %v1960_v20 = vadd.f32 -1.0, %v2636_v41 }
 0x2b5   :  { %v1448_v21 = vmin.f32 %v1310_v12, 0.0  ;;  %v1959_v14 = vadd.f32 -1.0, %v2638_v16  ;;  %vm1416_vm13 = vcmp.gt.f32.partialorder %v1310_v12, 0.0 }
 0x2b6   :  { %v1447_v22 = vmin.f32 %v1305_v19, 0.0  ;;  %v1572_v23 = vsel %vm1412_vm9, %v1290_v46, %v1960_v20  ;;  %vm1415_vm12 = vcmp.gt.f32.partialorder %v1305_v19, 0.0 }
 0x2b7   :  { %v1493_v18 = vmul.f32 1.442695, %v1448_v21  ;;  %v1571_v24 = vsel %vm1411_vm8, %v1285_v54, %v1959_v14 }
 0x2b8   :  { %v1491_v27 = vmul.f32 1.442695, %v1447_v22  ;;  %2332 = vmatprep.mubr.f32.mxu0 %v1571_v24 }
 0x2b9   :  { %2643 = vpow2.f32 %v1493_v18  ;;  %2333 = vmatmul.mubr.f32.gmra.mrb[24].mxu0 %v1572_v23 }
 0x2ba   :  { %2645 = vpow2.f32 %v1491_v27  ;;  %v2263_v29 = vpop.f32.mrb[30].mxu1 }
 0x2bb   :  { %v2640_v31 = vpop.eup %2639  ;;  %v1320_v32 = vadd.f32 %v2263_v29, %v3319_v0  ;;  %v1314_v28 = vpop.f32.mrb[31].mxu1 }
 0x2bc   :  { %v2642_v33 = vpop.eup %2641  ;;  %v1315_v26 = vadd.f32 %v3319_v0, %v1314_v28  ;;  %v1962_v25 = vadd.f32 -1.0, %v2640_v31 }
 0x2bd   :  { %v1450_v30 = vmin.f32 %v1320_v32, 0.0  ;;  %v1961_v35 = vadd.f32 -1.0, %v2642_v33  ;;  %vm1418_vm15 = vcmp.gt.f32.partialorder %v1320_v32, 0.0 }
 0x2be   :  { %v1449_v39 = vmin.f32 %v1315_v26, 0.0  ;;  %v1574_v44 = vsel %vm1414_vm11, %v1300_v57, %v1962_v25  ;;  %vm1417_vm14 = vcmp.gt.f32.partialorder %v1315_v26, 0.0 }
 0x2bf   :  { %v1497_v34 = vmul.f32 1.442695, %v1450_v30  ;;  %v1573_v40 = vsel %vm1413_vm10, %v1295_v59, %v1961_v35 }
 0x2c0   :  { %v1495_v43 = vmul.f32 1.442695, %v1449_v39  ;;  %2335 = vmatprep.mubr.f32.mxu0 %v1573_v40 }
 0x2c1   :  { %2647 = vpow2.f32 %v1497_v34  ;;  %2336 = vmatmul.mubr.f32.gmra.mrb[26].mxu0 %v1574_v44 }
 0x2c2   :  { %2649 = vpow2.f32 %v1495_v43  ;;  %v2266_v42 = vpop.f32.mrb[32].mxu1 }
 0x2c3   :  { %v2644_v36 = vpop.eup %2643  ;;  %v1330_v45 = vadd.f32 %v2266_v42, %v3319_v0  ;;  %v1324_v61 = vpop.f32.mrb[33].mxu1 }
 0x2c4   :  { %v2646_v37 = vpop.eup %2645  ;;  %v1325_v38 = vadd.f32 %v3319_v0, %v1324_v61  ;;  %v1964_v47 = vadd.f32 -1.0, %v2644_v36 }
 0x2c5   :  { %v1452_v60 = vmin.f32 %v1330_v45, 0.0  ;;  %v1963_v50 = vadd.f32 -1.0, %v2646_v37  ;;  %vm1420_vm1 = vcmp.gt.f32.partialorder %v1330_v45, 0.0 }
 0x2c6   :  { %v1451_v46 = vmin.f32 %v1325_v38, 0.0  ;;  %v1576_v10 = vsel %vm1416_vm13, %v1310_v12, %v1964_v47  ;;  %vm1419_vm0 = vcmp.gt.f32.partialorder %v1325_v38, 0.0 }
 0x2c7   :  { %v1501_v52 = vmul.f32 1.442695, %v1452_v60  ;;  %v1575_v53 = vsel %vm1415_vm12, %v1305_v19, %v1963_v50 }
 0x2c8   :  { %v1499_v54 = vmul.f32 1.442695, %v1451_v46  ;;  %2338 = vmatprep.mubr.f32.mxu0 %v1575_v53 }
 0x2c9   :  { %2651 = vpow2.f32 %v1501_v52  ;;  %2339 = vmatmul.mubr.f32.gmra.mrb[28].mxu0 %v1576_v10 }
 0x2ca   :  { %2653 = vpow2.f32 %v1499_v54  ;;  %v2269_v49 = vpop.f32.mrb[34].mxu1 }
 0x2cb   :  { %v2648_v56 = vpop.eup %2647  ;;  %v1340_v58 = vadd.f32 %v2269_v49, %v3319_v0  ;;  %v1334_v48 = vpop.f32.mrb[35].mxu1 }
 0x2cc   :  { %v2650_v4 = vpop.eup %2649  ;;  %v1335_v51 = vadd.f32 %v3319_v0, %v1334_v48  ;;  %v1966_v55 = vadd.f32 -1.0, %v2648_v56 }
 0x2cd   :  { %v1454_v62 = vmin.f32 %v1340_v58, 0.0  ;;  %v1965_v63 = vadd.f32 -1.0, %v2650_v4  ;;  %vm1422_vm3 = vcmp.gt.f32.partialorder %v1340_v58, 0.0 }
 0x2ce   :  { %v1453_v57 = vmin.f32 %v1335_v51, 0.0  ;;  %v1578_v3 = vsel %vm1418_vm15, %v1320_v32, %v1966_v55  ;;  %vm1421_vm2 = vcmp.gt.f32.partialorder %v1335_v51, 0.0 }
 0x2cf   :  { %v1505_v1 = vmul.f32 1.442695, %v1454_v62  ;;  %v1577_v5 = vsel %vm1417_vm14, %v1315_v26, %v1965_v63 }
 0x2d0   :  { %v1503_v59 = vmul.f32 1.442695, %v1453_v57  ;;  %2341 = vmatprep.mubr.f32.mxu0 %v1577_v5 }
 0x2d1   :  { %2655 = vpow2.f32 %v1505_v1  ;;  %2342 = vmatmul.mubr.f32.gmra.mrb[30].mxu0 %v1578_v3 }
 0x2d2   :  { %2657 = vpow2.f32 %v1503_v59  ;;  %v2272_v6 = vpop.f32.mrb[36].mxu1 }
 0x2d3   :  { %v2652_v9 = vpop.eup %2651  ;;  %v1350_v8 = vadd.f32 %v2272_v6, %v3319_v0  ;;  %v1344_v11 = vpop.f32.mrb[37].mxu1 }
 0x2d4   :  { %v2654_v2 = vpop.eup %2653  ;;  %v1345_v7 = vadd.f32 %v3319_v0, %v1344_v11  ;;  %v1968_v13 = vadd.f32 -1.0, %v2652_v9 }
 0x2d5   :  { %v1456_v15 = vmin.f32 %v1350_v8, 0.0  ;;  %v1967_v41 = vadd.f32 -1.0, %v2654_v2  ;;  %vm1424_vm5 = vcmp.gt.f32.partialorder %v1350_v8, 0.0 }
 0x2d6   :  { %v1455_v12 = vmin.f32 %v1345_v7, 0.0  ;;  %v1580_v20 = vsel %vm1420_vm1, %v1330_v45, %v1968_v13  ;;  %vm1423_vm4 = vcmp.gt.f32.partialorder %v1345_v7, 0.0 }
 0x2d7   :  { %v1509_v17 = vmul.f32 1.442695, %v1456_v15  ;;  %v1579_v16 = vsel %vm1419_vm0, %v1325_v38, %v1967_v41  ;;  %vm1843_vm0 = vcmask 15360  }
 0x2d8   :  { %v1507_v19 = vmul.f32 1.442695, %v1455_v12  ;;  %2344 = vmatprep.mubr.f32.mxu0 %v1579_v16 }
 0x2d9   :  { %2659 = vpow2.f32 %v1509_v17  ;;  %2345 = vmatmul.mubr.f32.gmra.mrb[32].mxu0 %v1580_v20 }
 0x2da   :  { %2661 = vpow2.f32 %v1507_v19  ;;  %v2275_v21 = vpop.f32.mrb[38].mxu1 }
 0x2db   :  { %v2656_v14 = vpop.eup %2655  ;;  %v1360_v22 = vadd.f32 %v2275_v21, %v3319_v0  ;;  %v1354_v18 = vpop.f32.mrb[39].mxu1 }
 0x2dc   :  { %v2658_v24 = vpop.eup %2657  ;;  %v1355_v27 = vadd.f32 %v3319_v0, %v1354_v18  ;;  %v1970_v23 = vadd.f32 -1.0, %v2656_v14 }
 0x2dd   :  { %v1458_v29 = vmin.f32 %v1360_v22, 0.0  ;;  %v1969_v31 = vadd.f32 -1.0, %v2658_v24  ;;  %vm1426_vm7 = vcmp.gt.f32.partialorder %v1360_v22, 0.0 }
 0x2de   :  { %v1457_v32 = vmin.f32 %v1355_v27, 0.0  ;;  %v1582_v25 = vsel %vm1422_vm3, %v1340_v58, %v1970_v23  ;;  %vm1425_vm6 = vcmp.gt.f32.partialorder %v1355_v27, 0.0 }
 0x2df   :  { %v1513_v28 = vmul.f32 1.442695, %v1458_v29  ;;  %v1581_v33 = vsel %vm1421_vm2, %v1335_v51, %v1969_v31 }
 0x2e0   :  { %v1511_v26 = vmul.f32 1.442695, %v1457_v32  ;;  %2347 = vmatprep.mubr.f32.mxu0 %v1581_v33 }
 0x2e1   :  { %2663 = vpow2.f32 %v1513_v28  ;;  %2348 = vmatmul.mubr.f32.gmra.mrb[34].mxu0 %v1582_v25 }
 0x2e2   :  { %2665 = vpow2.f32 %v1511_v26  ;;  %v2278_v30 = vpop.f32.mrb[40].mxu1 }
 0x2e3   :  { %v2660_v35 = vpop.eup %2659  ;;  %v1370_v39 = vadd.f32 %v2278_v30, %v3319_v0  ;;  %v1364_v34 = vpop.f32.mrb[41].mxu1 }
 0x2e4   :  { %v2662_v40 = vpop.eup %2661  ;;  %v1365_v43 = vadd.f32 %v3319_v0, %v1364_v34  ;;  %v1972_v44 = vadd.f32 -1.0, %v2660_v35 }
 0x2e5   :  { %v1460_v42 = vmin.f32 %v1370_v39, 0.0  ;;  %v1971_v36 = vadd.f32 -1.0, %v2662_v40  ;;  %vm1428_vm9 = vcmp.gt.f32.partialorder %v1370_v39, 0.0  ;;  %v3356_v40 = vld [vmem:[%s3526_s8] ss:$0 sm:$0xff] }
 0x2e6   :  { %v1459_v45 = vmin.f32 %v1365_v43, 0.0  ;;  %v1584_v47 = vsel %vm1424_vm5, %v1350_v8, %v1972_v44  ;;  %vm1427_vm8 = vcmp.gt.f32.partialorder %v1365_v43, 0.0 }
 0x2e7   :  { %v1517_v61 = vmul.f32 1.442695, %v1460_v42  ;;  %v1583_v37 = vsel %vm1423_vm4, %v1345_v7, %v1971_v36 }
 0x2e8   :  { %v1515_v38 = vmul.f32 1.442695, %v1459_v45  ;;  %2350 = vmatprep.mubr.f32.mxu0 %v1583_v37 }
 0x2e9   :  { %2667 = vpow2.f32 %v1517_v61  ;;  %2351 = vmatmul.mubr.f32.gmra.mrb[36].mxu0 %v1584_v47 }
 0x2ea   :  { %2669 = vpow2.f32 %v1515_v38  ;;  %v2281_v60 = vpop.f32.mrb[42].mxu1 }
 0x2eb   :  { %v2664_v50 = vpop.eup %2663  ;;  %v1380_v46 = vadd.f32 %v2281_v60, %v3319_v0  ;;  %v1374_v52 = vpop.f32.mrb[43].mxu1 }
 0x2ec   :  { %v2666_v53 = vpop.eup %2665  ;;  %v1375_v54 = vadd.f32 %v3319_v0, %v1374_v52  ;;  %v1974_v10 = vadd.f32 -1.0, %v2664_v50 }
 0x2ed   :  { %v1462_v49 = vmin.f32 %v1380_v46, 0.0  ;;  %v1973_v56 = vadd.f32 -1.0, %v2666_v53  ;;  %vm1430_vm11 = vcmp.gt.f32.partialorder %v1380_v46, 0.0 }
 0x2ee   :  { %v1461_v58 = vmin.f32 %v1375_v54, 0.0  ;;  %v1586_v55 = vsel %vm1426_vm7, %v1360_v22, %v1974_v10  ;;  %vm1429_vm10 = vcmp.gt.f32.partialorder %v1375_v54, 0.0 }
 0x2ef   :  { %v1521_v48 = vmul.f32 1.442695, %v1462_v49  ;;  %v1585_v4 = vsel %vm1425_vm6, %v1355_v27, %v1973_v56 }
 0x2f0   :  { %v1519_v51 = vmul.f32 1.442695, %v1461_v58  ;;  %2353 = vmatprep.mubr.f32.mxu0 %v1585_v4 }
 0x2f1   :  { %2671 = vpow2.f32 %v1521_v48  ;;  %2354 = vmatmul.mubr.f32.gmra.mrb[38].mxu0 %v1586_v55 }
 0x2f2   :  { %2673 = vpow2.f32 %v1519_v51  ;;  %v2284_v62 = vpop.f32.mrb[44].mxu1 }
 0x2f3   :  { %v2668_v63 = vpop.eup %2667  ;;  %v1390_v57 = vadd.f32 %v2284_v62, %v3319_v0  ;;  %v1384_v1 = vpop.f32.mrb[45].mxu1 }
 0x2f4   :  { %v2670_v5 = vpop.eup %2669  ;;  %v1385_v59 = vadd.f32 %v3319_v0, %v1384_v1  ;;  %v1976_v3 = vadd.f32 -1.0, %v2668_v63 }
 0x2f5   :  { %v1464_v6 = vmin.f32 %v1390_v57, 0.0  ;;  %v1975_v9 = vadd.f32 -1.0, %v2670_v5  ;;  %vm1432_vm13 = vcmp.gt.f32.partialorder %v1390_v57, 0.0 }
 0x2f6   :  { %v1463_v8 = vmin.f32 %v1385_v59, 0.0  ;;  %v1588_v13 = vsel %vm1428_vm9, %v1370_v39, %v1976_v3  ;;  %vm1431_vm12 = vcmp.gt.f32.partialorder %v1385_v59, 0.0 }
 0x2f7   :  { %v1525_v11 = vmul.f32 1.442695, %v1464_v6  ;;  %v1587_v2 = vsel %vm1427_vm8, %v1365_v43, %v1975_v9 }
 0x2f8   :  { %v1523_v7 = vmul.f32 1.442695, %v1463_v8  ;;  %2356 = vmatprep.mubr.f32.mxu0 %v1587_v2 }
 0x2f9   :  { %2675 = vpow2.f32 %v1525_v11  ;;  %2357 = vmatmul.mubr.f32.gmra.mrb[40].mxu0 %v1588_v13 }
 0x2fa   :  { %2677 = vpow2.f32 %v1523_v7  ;;  %v2287_v15 = vpop.f32.mrb[46].mxu1 }
 0x2fb   :  { %v2672_v41 = vpop.eup %2671  ;;  %v1400_v12 = vadd.f32 %v2287_v15, %v3319_v0  ;;  %v1394_v17 = vpop.f32.mrb[47].mxu1 }
 0x2fc   :  { %v2674_v16 = vpop.eup %2673  ;;  %v1395_v19 = vadd.f32 %v3319_v0, %v1394_v17  ;;  %v1978_v20 = vadd.f32 -1.0, %v2672_v41 }
 0x2fd   :  { %v1466_v21 = vmin.f32 %v1400_v12, 0.0  ;;  %v1977_v14 = vadd.f32 -1.0, %v2674_v16  ;;  %vm1434_vm15 = vcmp.gt.f32.partialorder %v1400_v12, 0.0 }
 0x2fe   :  { %v1465_v22 = vmin.f32 %v1395_v19, 0.0  ;;  %v1590_v23 = vsel %vm1430_vm11, %v1380_v46, %v1978_v20  ;;  %vm1433_vm14 = vcmp.gt.f32.partialorder %v1395_v19, 0.0 }
 0x2ff   :  { %v1529_v18 = vmul.f32 1.442695, %v1466_v21  ;;  %v1589_v24 = vsel %vm1429_vm10, %v1375_v54, %v1977_v14 }
 0x300   :  { %v1527_v27 = vmul.f32 1.442695, %v1465_v22  ;;  %2359 = vmatprep.mubr.f32.mxu0 %v1589_v24 }
 0x301   :  { %2679 = vpow2.f32 %v1529_v18  ;;  %2360 = vmatmul.mubr.f32.gmra.mrb[42].mxu0 %v1590_v23 }
 0x302   :  { %2681 = vpow2.f32 %v1527_v27 }
 0x303   :  { %v2676_v29 = vpop.eup %2675 }
 0x304   :  { %v2678_v31 = vpop.eup %2677  ;;  %v1980_v32 = vadd.f32 -1.0, %v2676_v29 }
 0x305   :  { %v1979_v28 = vadd.f32 -1.0, %v2678_v31 }
 0x306   :  { %v1592_v33 = vsel %vm1432_vm13, %v1390_v57, %v1980_v32 }
 0x307   :  { %v1591_v0 = vsel %vm1431_vm12, %v1385_v59, %v1979_v28 }
 0x308   :  { %2362 = vmatprep.mubr.f32.mxu0 %v1591_v0 }
 0x309   :  { %2363 = vmatmul.mubr.f32.gmra.mrb[44].mxu0 %v1592_v33 }
 0x30b   :  { %v2680_v26 = vpop.eup %2679 }
 0x30c   :  { %v2682_v25 = vpop.eup %2681  ;;  %v1982_v30 = vadd.f32 -1.0, %v2680_v26 }
 0x30d   :  { %v1981_v35 = vadd.f32 -1.0, %v2682_v25 }
 0x30e   :  { %v1594_v34 = vsel %vm1434_vm15, %v1400_v12, %v1982_v30 }
 0x30f   :  { %v1593_v39 = vsel %vm1433_vm14, %v1395_v19, %v1981_v35 }
 0x310   :  { %2365 = vmatprep.mubr.f32.mxu0 %v1593_v39 }
 0x311   :  { %2366 = vmatmul.mubr.f32.gmra.mrb[46].mxu0 %v1594_v34 }
 0x36c   :  { %v2322_v43 = vpop.f32.mrb[16].mxu0 }
 0x36d   :  { %v1690_v44 = vadd.f32 %v2322_v43, %v3356_v40  ;;  %v1684_v42 = vpop.f32.mrb[17].mxu0 }
 0x36e   :  { %v1685_v36 = vadd.f32 %v3356_v40, %v1684_v42 }
 0x36f   :  { %1845 = vst.msk [vmem:[%s3527_s9 + $0x8] sm:$0xff] %vm1843_vm0, %v1690_v44 }
 0x370   :  { %1844 = vst.msk [vmem:[%s3527_s9] sm:$0xff] %vm1843_vm0, %v1685_v36 }
 0x374   :  { %v2325_v45 = vpop.f32.mrb[18].mxu0 }
 0x375   :  { %v1700_v61 = vadd.f32 %v2325_v45, %v3356_v40  ;;  %v1694_v37 = vpop.f32.mrb[19].mxu0 }
 0x376   :  { %v1695_v38 = vadd.f32 %v3356_v40, %v1694_v37 }
 0x377   :  { %1847 = vst.msk [vmem:[%s3527_s9 + $0x18] sm:$0xff] %vm1843_vm0, %v1700_v61 }
 0x378   :  { %1846 = vst.msk [vmem:[%s3527_s9 + $0x10] sm:$0xff] %vm1843_vm0, %v1695_v38 }
 0x37c   :  { %v2328_v47 = vpop.f32.mrb[20].mxu0 }
 0x37d   :  { %v1710_v60 = vadd.f32 %v2328_v47, %v3356_v40  ;;  %v1704_v50 = vpop.f32.mrb[21].mxu0 }
 0x37e   :  { %v1705_v46 = vadd.f32 %v3356_v40, %v1704_v50 }
 0x37f   :  { %1849 = vst.msk [vmem:[%s3527_s9 + $0x28] sm:$0xff] %vm1843_vm0, %v1710_v60 }
 0x380   :  { %1848 = vst.msk [vmem:[%s3527_s9 + $0x20] sm:$0xff] %vm1843_vm0, %v1705_v46 }
 0x384   :  { %v2331_v52 = vpop.f32.mrb[22].mxu0 }
 0x385   :  { %v1720_v53 = vadd.f32 %v2331_v52, %v3356_v40  ;;  %v1714_v54 = vpop.f32.mrb[23].mxu0 }
 0x386   :  { %v1715_v10 = vadd.f32 %v3356_v40, %v1714_v54 }
 0x387   :  { %1851 = vst.msk [vmem:[%s3527_s9 + $0x38] sm:$0xff] %vm1843_vm0, %v1720_v53 }
 0x388   :  { %1850 = vst.msk [vmem:[%s3527_s9 + $0x30] sm:$0xff] %vm1843_vm0, %v1715_v10 }
 0x38c   :  { %v2334_v49 = vpop.f32.mrb[24].mxu0 }
 0x38d   :  { %v1730_v56 = vadd.f32 %v2334_v49, %v3356_v40  ;;  %v1724_v58 = vpop.f32.mrb[25].mxu0 }
 0x38e   :  { %v1725_v48 = vadd.f32 %v3356_v40, %v1724_v58 }
 0x38f   :  { %1853 = vst.msk [vmem:[%s3527_s9 + $0x48] sm:$0xff] %vm1843_vm0, %v1730_v56 }
 0x390   :  { %1852 = vst.msk [vmem:[%s3527_s9 + $0x40] sm:$0xff] %vm1843_vm0, %v1725_v48 }
 0x394   :  { %v2337_v4 = vpop.f32.mrb[26].mxu0 }
 0x395   :  { %v1740_v51 = vadd.f32 %v2337_v4, %v3356_v40  ;;  %v1734_v55 = vpop.f32.mrb[27].mxu0 }
 0x396   :  { %v1735_v62 = vadd.f32 %v3356_v40, %v1734_v55 }
 0x397   :  { %1855 = vst.msk [vmem:[%s3527_s9 + $0x58] sm:$0xff] %vm1843_vm0, %v1740_v51 }
 0x398   :  { %1854 = vst.msk [vmem:[%s3527_s9 + $0x50] sm:$0xff] %vm1843_vm0, %v1735_v62 }
 0x39c   :  { %v2340_v63 = vpop.f32.mrb[28].mxu0 }
 0x39d   :  { %v1750_v57 = vadd.f32 %v2340_v63, %v3356_v40  ;;  %v1744_v1 = vpop.f32.mrb[29].mxu0 }
 0x39e   :  { %v1745_v5 = vadd.f32 %v3356_v40, %v1744_v1 }
 0x39f   :  { %1857 = vst.msk [vmem:[%s3527_s9 + $0x68] sm:$0xff] %vm1843_vm0, %v1750_v57 }
 0x3a0   :  { %1856 = vst.msk [vmem:[%s3527_s9 + $0x60] sm:$0xff] %vm1843_vm0, %v1745_v5 }
 0x3a4   :  { %v2343_v59 = vpop.f32.mrb[30].mxu0 }
 0x3a5   :  { %v1760_v3 = vadd.f32 %v2343_v59, %v3356_v40  ;;  %v1754_v6 = vpop.f32.mrb[31].mxu0 }
 0x3a6   :  { %v1755_v9 = vadd.f32 %v3356_v40, %v1754_v6 }
 0x3a7   :  { %1859 = vst.msk [vmem:[%s3527_s9 + $0x78] sm:$0xff] %vm1843_vm0, %v1760_v3 }
 0x3a8   :  { %1858 = vst.msk [vmem:[%s3527_s9 + $0x70] sm:$0xff] %vm1843_vm0, %v1755_v9 }
 0x3ac   :  { %v2346_v8 = vpop.f32.mrb[32].mxu0 }
 0x3ad   :  { %v1770_v11 = vadd.f32 %v2346_v8, %v3356_v40  ;;  %v1764_v2 = vpop.f32.mrb[33].mxu0 }
 0x3ae   :  { %v1765_v7 = vadd.f32 %v3356_v40, %v1764_v2 }
 0x3af   :  { %1861 = vst.msk [vmem:[%s3527_s9 + $0x88] sm:$0xff] %vm1843_vm0, %v1770_v11 }
 0x3b0   :  { %1860 = vst.msk [vmem:[%s3527_s9 + $0x80] sm:$0xff] %vm1843_vm0, %v1765_v7 }
 0x3b4   :  { %v2349_v13 = vpop.f32.mrb[34].mxu0 }
 0x3b5   :  { %v1780_v15 = vadd.f32 %v2349_v13, %v3356_v40  ;;  %v1774_v41 = vpop.f32.mrb[35].mxu0 }
 0x3b6   :  { %v1775_v12 = vadd.f32 %v3356_v40, %v1774_v41 }
 0x3b7   :  { %1863 = vst.msk [vmem:[%s3527_s9 + $0x98] sm:$0xff] %vm1843_vm0, %v1780_v15 }
 0x3b8   :  { %1862 = vst.msk [vmem:[%s3527_s9 + $0x90] sm:$0xff] %vm1843_vm0, %v1775_v12 }
 0x3bc   :  { %v2352_v17 = vpop.f32.mrb[36].mxu0 }
 0x3bd   :  { %v1790_v16 = vadd.f32 %v2352_v17, %v3356_v40  ;;  %v1784_v19 = vpop.f32.mrb[37].mxu0 }
 0x3be   :  { %v1785_v20 = vadd.f32 %v3356_v40, %v1784_v19 }
 0x3bf   :  { %1865 = vst.msk [vmem:[%s3527_s9 + $0xa8] sm:$0xff] %vm1843_vm0, %v1790_v16 }
 0x3c0   :  { %1864 = vst.msk [vmem:[%s3527_s9 + $0xa0] sm:$0xff] %vm1843_vm0, %v1785_v20 }
 0x3c4   :  { %v2355_v21 = vpop.f32.mrb[38].mxu0 }
 0x3c5   :  { %v1800_v14 = vadd.f32 %v2355_v21, %v3356_v40  ;;  %v1794_v22 = vpop.f32.mrb[39].mxu0 }
 0x3c6   :  { %v1795_v18 = vadd.f32 %v3356_v40, %v1794_v22 }
 0x3c7   :  { %1867 = vst.msk [vmem:[%s3527_s9 + $0xb8] sm:$0xff] %vm1843_vm0, %v1800_v14 }
 0x3c8   :  { %1866 = vst.msk [vmem:[%s3527_s9 + $0xb0] sm:$0xff] %vm1843_vm0, %v1795_v18 }
 0x3cc   :  { %v2358_v24 = vpop.f32.mrb[40].mxu0 }
 0x3cd   :  { %v1810_v27 = vadd.f32 %v2358_v24, %v3356_v40  ;;  %v1804_v23 = vpop.f32.mrb[41].mxu0 }
 0x3ce   :  { %v1805_v29 = vadd.f32 %v3356_v40, %v1804_v23 }
 0x3cf   :  { %1869 = vst.msk [vmem:[%s3527_s9 + $0xc8] sm:$0xff] %vm1843_vm0, %v1810_v27 }
 0x3d0   :  { %1868 = vst.msk [vmem:[%s3527_s9 + $0xc0] sm:$0xff] %vm1843_vm0, %v1805_v29 }
 0x3d4   :  { %v2361_v31 = vpop.f32.mrb[42].mxu0 }
 0x3d5   :  { %v1820_v32 = vadd.f32 %v2361_v31, %v3356_v40  ;;  %v1814_v28 = vpop.f32.mrb[43].mxu0 }
 0x3d6   :  { %v1815_v0 = vadd.f32 %v3356_v40, %v1814_v28 }
 0x3d7   :  { %1871 = vst.msk [vmem:[%s3527_s9 + $0xd8] sm:$0xff] %vm1843_vm0, %v1820_v32 }
 0x3d8   :  { %1870 = vst.msk [vmem:[%s3527_s9 + $0xd0] sm:$0xff] %vm1843_vm0, %v1815_v0 }
 0x3dc   :  { %v2364_v33 = vpop.f32.mrb[44].mxu0 }
 0x3dd   :  { %v1830_v26 = vadd.f32 %v2364_v33, %v3356_v40  ;;  %v1824_v25 = vpop.f32.mrb[45].mxu0 }
 0x3de   :  { %v1825_v30 = vadd.f32 %v3356_v40, %v1824_v25 }
 0x3df   :  { %1873 = vst.msk [vmem:[%s3527_s9 + $0xe8] sm:$0xff] %vm1843_vm0, %v1830_v26 }
 0x3e0   :  { %1872 = vst.msk [vmem:[%s3527_s9 + $0xe0] sm:$0xff] %vm1843_vm0, %v1825_v30 }
 0x3e4   :  { %v2367_v35 = vpop.f32.mrb[46].mxu0 }
 0x3e5   :  { %v1840_v39 = vadd.f32 %v2367_v35, %v3356_v40  ;;  %v1834_v34 = vpop.f32.mrb[47].mxu0 }
 0x3e6   :  { %v1835_v43 = vadd.f32 %v3356_v40, %v1834_v34 }
 0x3e7   :  { %1875 = vst.msk [vmem:[%s3527_s9 + $0xf8] sm:$0xff] %vm1843_vm0, %v1840_v39 }
 0x3e8   :  { %1874 = vst.msk [vmem:[%s3527_s9 + $0xf0] sm:$0xff] %vm1843_vm0, %v1835_v43 }
 0x3e9   :  { %1880 = vsyncpa [#allocation3], 1 }
 0x3ea   :  { %1881 = vsyncpa [#allocation5], 1 }

</bundles_post_ra>
